<compile_context>
chip_gen: v6e
topology: v6e:2x2x1
jax: 0.10.0
libtpu: 0.0.40
codegen_flags: <defaults>
</compile_context>

<pallas_src>
import functools
import math

import jax
import jax.numpy as jnp
from jax import lax
from jax.experimental import pallas as pl
from jax.experimental.pallas import tpu as pltpu

_VMEM_LIMIT = 64 * 1024 * 1024  # <= physical VMEM on every generation (v7x: 64 MiB)


# --------------------------------------------------------------------------
# Tile helper
# --------------------------------------------------------------------------

def _pick_tile(dim, target, quantum):
    """Largest tile <= target that divides dim and is a multiple of quantum.
    Falls back to the full dim (always layout-legal for the (8,128) rule)."""
    if dim <= target:
        return dim
    t = (target // quantum) * quantum
    while t >= quantum:
        if dim % t == 0:
            return t
        t -= quantum
    return dim


# --------------------------------------------------------------------------
# Tiled linear: out = x @ w + b (+ residual)   bf16 operands, f32 accumulate
# --------------------------------------------------------------------------

def _linear_kernel(x_ref, w_ref, b_ref, *rest, add_residual):
    if add_residual:
        r_ref, o_ref, acc_ref = rest
    else:
        o_ref, acc_ref = rest
        r_ref = None
    k = pl.program_id(2)

    @pl.when(k == 0)
    def _():
        acc_ref[...] = jnp.zeros_like(acc_ref)

    acc_ref[...] += jnp.dot(x_ref[...], w_ref[...],
                            preferred_element_type=jnp.float32)

    @pl.when(k == pl.num_programs(2) - 1)
    def _():
        out = acc_ref[...] + b_ref[...]
        if add_residual:
            out = out + r_ref[...].astype(jnp.float32)
        o_ref[...] = out.astype(o_ref.dtype)


def linear_pallas(x2d, w, b, residual=None, out_dtype=jnp.bfloat16,
                  tm_target=512, tn_target=512, tk_target=512):
    M, K = x2d.shape
    N = w.shape[1]
    tm = _pick_tile(M, tm_target, 8)
    tn = _pick_tile(N, tn_target, 128)
    tk = _pick_tile(K, tk_target, 128)
    grid = (M // tm, N // tn, K // tk)

    in_specs = [pl.BlockSpec((tm, tk), lambda i, j, k: (i, k)),
                pl.BlockSpec((tk, tn), lambda i, j, k: (k, j)),
                pl.BlockSpec((1, tn), lambda i, j, k: (0, j))]
    args = [x2d, w, b.reshape(1, N)]
    add_residual = residual is not None
    if add_residual:
        in_specs.append(pl.BlockSpec((tm, tn), lambda i, j, k: (i, j)))
        args.append(residual)

    kernel = functools.partial(_linear_kernel, add_residual=add_residual)
    return pl.pallas_call(
        kernel,
        out_shape=jax.ShapeDtypeStruct((M, N), out_dtype),
        grid=grid,
        in_specs=in_specs,
        out_specs=pl.BlockSpec((tm, tn), lambda i, j, k: (i, j)),
        scratch_shapes=[pltpu.VMEM((tm, tn), jnp.float32)],
        compiler_params=pltpu.CompilerParams(
            dimension_semantics=("parallel", "parallel", "arbitrary"),
            vmem_limit_bytes=_VMEM_LIMIT),
    )(*args)


# --------------------------------------------------------------------------
# FFN: relu(x @ w1 + b1) @ w2 + b2 + residual
# H-tiled: grid (M//tm, H//th), weights streamed in th chunks, f32 accumulator
# --------------------------------------------------------------------------

def _ffn_kernel(x_ref, w1_ref, b1_ref, w2_ref, b2_ref, r_ref, o_ref, acc_ref):
    hi = pl.program_id(1)

    @pl.when(hi == 0)
    def _():
        acc_ref[...] = jnp.zeros_like(acc_ref)

    h = jnp.dot(x_ref[...], w1_ref[...],
                preferred_element_type=jnp.float32) + b1_ref[...]
    h = jnp.maximum(h, 0.0).astype(w2_ref.dtype)
    acc_ref[...] += jnp.dot(h, w2_ref[...], preferred_element_type=jnp.float32)

    @pl.when(hi == pl.num_programs(1) - 1)
    def _():
        o_ref[...] = (acc_ref[...] + b2_ref[...]
                      + r_ref[...].astype(jnp.float32)).astype(o_ref.dtype)


def ffn_pallas(x2d, w1, b1, w2, b2, residual, out_dtype=jnp.bfloat16,
               tm_target=512, th_target=512):
    M, K = x2d.shape
    H = w1.shape[1]
    N = w2.shape[1]
    tm = _pick_tile(M, tm_target, 8)
    th = _pick_tile(H, th_target, 128)
    grid = (M // tm, H // th)
    return pl.pallas_call(
        _ffn_kernel,
        out_shape=jax.ShapeDtypeStruct((M, N), out_dtype),
        grid=grid,
        in_specs=[pl.BlockSpec((tm, K), lambda i, h: (i, 0)),
                  pl.BlockSpec((K, th), lambda i, h: (0, h)),
                  pl.BlockSpec((1, th), lambda i, h: (0, h)),
                  pl.BlockSpec((th, N), lambda i, h: (h, 0)),
                  pl.BlockSpec((1, N), lambda i, h: (0, 0)),
                  pl.BlockSpec((tm, N), lambda i, h: (i, 0))],
        out_specs=pl.BlockSpec((tm, N), lambda i, h: (i, 0)),
        scratch_shapes=[pltpu.VMEM((tm, N), jnp.float32)],
        compiler_params=pltpu.CompilerParams(
            dimension_semantics=("parallel", "arbitrary"),
            vmem_limit_bytes=_VMEM_LIMIT),
    )(x2d, w1, b1.reshape(1, H), w2, b2.reshape(1, N), residual)


# --------------------------------------------------------------------------
# LayerNorm (residual already fused into the producing matmul)
# --------------------------------------------------------------------------

def _ln_kernel(x_ref, g_ref, b_ref, o_ref):
    x = x_ref[...].astype(jnp.float32)
    mean = jnp.mean(x, axis=-1, keepdims=True)
    var = jnp.mean((x - mean) ** 2, axis=-1, keepdims=True)
    y = (x - mean) * lax.rsqrt(var + 1e-5)
    o_ref[...] = (g_ref[...] * y + b_ref[...]).astype(o_ref.dtype)


def layernorm_pallas(x2d, gamma, beta, out_dtype=jnp.bfloat16, tm_target=512):
    M, D = x2d.shape
    tm = _pick_tile(M, tm_target, 8)
    return pl.pallas_call(
        _ln_kernel,
        out_shape=jax.ShapeDtypeStruct((M, D), out_dtype),
        grid=(M // tm,),
        in_specs=[pl.BlockSpec((tm, D), lambda i: (i, 0)),
                  pl.BlockSpec((1, D), lambda i: (0, 0)),
                  pl.BlockSpec((1, D), lambda i: (0, 0))],
        out_specs=pl.BlockSpec((tm, D), lambda i: (i, 0)),
        compiler_params=pltpu.CompilerParams(
            dimension_semantics=("parallel",)),
    )(x2d, gamma.reshape(1, D), beta.reshape(1, D))


# --------------------------------------------------------------------------
# Flash-style multi-head attention
#   grid = (B, Sq//tq, Skv//tkv), online softmax scratch (m, l, acc) per head,
#   per-head column stores (no concatenate), optional additive mask.
# --------------------------------------------------------------------------

def _make_attn_kernel(num_heads, head_dim, scale, has_mask):
    def kernel(*refs):
        if has_mask:
            q_ref, k_ref, v_ref, m_ref, o_ref, m_sc, l_sc, acc_sc = refs
        else:
            q_ref, k_ref, v_ref, o_ref, m_sc, l_sc, acc_sc = refs
            m_ref = None
        kv_idx = pl.program_id(2)

        @pl.when(kv_idx == 0)
        def _():
            m_sc[...] = jnp.full_like(m_sc, -1e30)
            l_sc[...] = jnp.zeros_like(l_sc)
            acc_sc[...] = jnp.zeros_like(acc_sc)

        q = q_ref[0]          # (tq, D)   bf16
        k = k_ref[0]          # (tkv, D)  bf16
        v = v_ref[0]          # (tkv, D)  bf16
        mask = m_ref[0].astype(jnp.float32) if has_mask else None

        for h in range(num_heads):
            lo = h * head_dim
            qh = q[:, lo:lo + head_dim]
            kh = k[:, lo:lo + head_dim]
            vh = v[:, lo:lo + head_dim]
            # scores via dot_general contracting last dims (no k transpose)
            s = lax.dot_general(qh, kh, (((1,), (1,)), ((), ())),
                                preferred_element_type=jnp.float32) * scale
            if mask is not None:
                s = s + mask
            m_prev = m_sc[h]                                   # (tq, 1)
            m_new = jnp.maximum(m_prev, jnp.max(s, axis=-1, keepdims=True))
            alpha = jnp.exp(m_prev - m_new)
            p = jnp.exp(s - m_new)
            l_sc[h] = alpha * l_sc[h] + jnp.sum(p, axis=-1, keepdims=True)
            acc_sc[h] = alpha * acc_sc[h] + jnp.dot(
                p.astype(vh.dtype), vh, preferred_element_type=jnp.float32)
            m_sc[h] = m_new

        @pl.when(kv_idx == pl.num_programs(2) - 1)
        def _():
            for h in range(num_heads):
                inv = pl.reciprocal(l_sc[h], approx=True)
                o_ref[0, :, h * head_dim:(h + 1) * head_dim] = (
                    acc_sc[h] * inv).astype(o_ref.dtype)

    return kernel


def attention_pallas(q, k, v, mask, num_heads, tq_target=256, tkv_target=256):
    B, Sq, D = q.shape
    Skv = k.shape[1]
    head_dim = D // num_heads
    scale = 1.0 / math.sqrt(head_dim)
    tq = _pick_tile(Sq, tq_target, 8)
    tkv = _pick_tile(Skv, tkv_target, 128)
    grid = (B, Sq // tq, Skv // tkv)
    has_mask = mask is not None

    in_specs = [pl.BlockSpec((1, tq, D), lambda b, qi, ki: (b, qi, 0)),
                pl.BlockSpec((1, tkv, D), lambda b, qi, ki: (b, ki, 0)),
                pl.BlockSpec((1, tkv, D), lambda b, qi, ki: (b, ki, 0))]
    args = [q, k, v]
    if has_mask:
        in_specs.append(pl.BlockSpec((1, tq, tkv), lambda b, qi, ki: (b, qi, ki)))
        args.append(mask)

    kernel = _make_attn_kernel(num_heads, head_dim, scale, has_mask)
    return pl.pallas_call(
        kernel,
        out_shape=jax.ShapeDtypeStruct((B, Sq, D), q.dtype),
        grid=grid,
        in_specs=in_specs,
        out_specs=pl.BlockSpec((1, tq, D), lambda b, qi, ki: (b, qi, 0)),
        scratch_shapes=[pltpu.VMEM((num_heads, tq, 1), jnp.float32),
                        pltpu.VMEM((num_heads, tq, 1), jnp.float32),
                        pltpu.VMEM((num_heads, tq, head_dim), jnp.float32)],
        compiler_params=pltpu.CompilerParams(
            dimension_semantics=("parallel", "parallel", "arbitrary"),
            vmem_limit_bytes=_VMEM_LIMIT),
    )(*args)


# --------------------------------------------------------------------------
# Model glue (plain JAX): masks, embeddings, layer wiring
# --------------------------------------------------------------------------

def _prep_mask(mask, B, Sq, Skv):
    """Optional additive float mask (B, Sq, Skv); None stays None (no DMA)."""
    if mask is None:
        return None
    mask = jnp.asarray(mask, jnp.float32)
    if mask.ndim == 2:
        mask = jnp.broadcast_to(mask[None], (B, Sq, Skv))
    return mask


def multi_head_attention(x, p, num_heads, mask, residual):
    # NOTE: the PyTorch qkv_layer packs q/k/v into one (D, 3D) linear; the
    # separate w_q/w_k/w_v column blocks here are self-consistent with this
    # script's random init (repack columns when loading real PyTorch weights).
    B, S, D = x.shape
    x2 = x.reshape(B * S, D)
    q = linear_pallas(x2, p['w_q'], p['b_q']).reshape(B, S, D)
    k = linear_pallas(x2, p['w_k'], p['b_k']).reshape(B, S, D)
    v = linear_pallas(x2, p['w_v'], p['b_v']).reshape(B, S, D)
    vals = attention_pallas(q, k, v, _prep_mask(mask, B, S, S), num_heads)
    # residual add fused into the out-projection epilogue (dropout = identity)
    out = linear_pallas(vals.reshape(B * S, D), p['w_out'], p['b_out'],
                        residual=residual.reshape(B * S, D))
    return out.reshape(B, S, D)


def multi_head_cross_attention(x, y, p, num_heads, mask, residual):
    # x: encoder output (K/V), y: decoder stream (Q)
    B, S, D = x.shape
    x2 = x.reshape(B * S, D)
    y2 = y.reshape(B * S, D)
    k = linear_pallas(x2, p['w_k'], p['b_k']).reshape(B, S, D)
    v = linear_pallas(x2, p['w_v'], p['b_v']).reshape(B, S, D)
    q = linear_pallas(y2, p['w_q'], p['b_q']).reshape(B, S, D)
    vals = attention_pallas(q, k, v, _prep_mask(mask, B, S, S), num_heads)
    out = linear_pallas(vals.reshape(B * S, D), p['w_out'], p['b_out'],
                        residual=residual.reshape(B * S, D))
    return out.reshape(B, S, D)


def layer_norm(x, p):
    B, S, D = x.shape
    return layernorm_pallas(x.reshape(B * S, D), p['gamma'], p['beta']).reshape(B, S, D)


def feed_forward(x, p, residual):
    B, S, D = x.shape
    return ffn_pallas(x.reshape(B * S, D), p['w1'], p['b1'], p['w2'], p['b2'],
                      residual.reshape(B * S, D)).reshape(B, S, D)


def encoder_layer(x, p, num_heads, self_mask):
    x = multi_head_attention(x, p['attn'], num_heads, self_mask, residual=x)
    x = layer_norm(x, p['norm1'])                 # dropout1 == identity (eval)
    x = feed_forward(x, p['ffn'], residual=x)
    x = layer_norm(x, p['norm2'])                 # dropout2 == identity (eval)
    return x


def decoder_layer(x, y, p, num_heads, self_mask, cross_mask):
    y = multi_head_attention(y, p['self_attn'], num_heads, self_mask, residual=y)
    y = layer_norm(y, p['norm1'])
    y = multi_head_cross_attention(x, y, p['cross_attn'], num_heads, cross_mask,
                                   residual=y)
    y = layer_norm(y, p['norm2'])
    y = feed_forward(y, p['ffn'], residual=y)
    y = layer_norm(y, p['norm3'])
    return y


def positional_encoding(d_model, max_seq):
    even_i = jnp.arange(0, d_model, 2, dtype=jnp.float32)
    denom = jnp.power(jnp.float32(10000.0), even_i / d_model)
    pos = jnp.arange(max_seq, dtype=jnp.float32).reshape(max_seq, 1)
    even_pe = jnp.sin(pos / denom)
    odd_pe = jnp.cos(pos / denom)
    stacked = jnp.stack([even_pe, odd_pe], axis=2)
    return stacked.reshape(max_seq, d_model)      # interleaved sin/cos


def sentence_embedding(tokens, emb_table, d_model, max_seq):
    emb = jnp.take(emb_table, tokens, axis=0)     # (B, S, D) f32 gather (XLA)
    pe = positional_encoding(d_model, max_seq)
    return (emb + pe[None, :, :]).astype(jnp.bfloat16)   # dropout == identity


def transformer_forward(params, x_tokens, y_tokens,
                        enc_self_mask=None, dec_self_mask=None, dec_cross_mask=None,
                        *, num_heads, d_model, max_seq):
    # Encoder
    x = sentence_embedding(x_tokens, params['enc_emb'], d_model, max_seq)
    for lp in params['enc_layers']:
        x = encoder_layer(x, lp, num_heads, enc_self_mask)
    # Decoder
    y = sentence_embedding(y_tokens, params['dec_emb'], d_model, max_seq)
    for lp in params['dec_layers']:
        y = decoder_layer(x, y, lp, num_heads, dec_self_mask, dec_cross_mask)
    # Final projection (logits in f32)
    B, S, D = y.shape
    out = linear_pallas(y.reshape(B * S, D), params['w_final'], params['b_final'],
                        out_dtype=jnp.float32)
    return out.reshape(B, S, -1)


# --------------------------------------------------------------------------
# Deterministic parameter initialization (shapes from the PyTorch __init__).
# Weights stored bf16 (MXU-native), biases / norm params in f32.
# --------------------------------------------------------------------------

def init_params(key, d_model, ffn_hidden, num_layers, en_vocab, kn_vocab, kn_out_vocab):
    keys = iter(jax.random.split(key, 512))

    def lin(in_f, out_f):
        bound = 1.0 / math.sqrt(in_f)
        w = jax.random.uniform(next(keys), (in_f, out_f), jnp.float32, -bound, bound)
        b = jax.random.uniform(next(keys), (out_f,), jnp.float32, -bound, bound)
        return w.astype(jnp.bfloat16), b

    def norm():
        return {'gamma': jnp.ones((d_model,), jnp.float32),
                'beta': jnp.zeros((d_model,), jnp.float32)}

    def mha_params():
        w_q, b_q = lin(d_model, d_model)
        w_k, b_k = lin(d_model, d_model)
        w_v, b_v = lin(d_model, d_model)
        w_out, b_out = lin(d_model, d_model)
        return {'w_q': w_q, 'b_q': b_q, 'w_k': w_k, 'b_k': b_k,
                'w_v': w_v, 'b_v': b_v, 'w_out': w_out, 'b_out': b_out}

    def ffn_params():
        w1, b1 = lin(d_model, ffn_hidden)
        w2, b2 = lin(ffn_hidden, d_model)
        return {'w1': w1, 'b1': b1, 'w2': w2, 'b2': b2}

    enc_layers = [{'attn': mha_params(), 'norm1': norm(),
                   'ffn': ffn_params(), 'norm2': norm()}
                  for _ in range(num_layers)]
    dec_layers = [{'self_attn': mha_params(), 'norm1': norm(),
                   'cross_attn': mha_params(), 'norm2': norm(),
                   'ffn': ffn_params(), 'norm3': norm()}
                  for _ in range(num_layers)]

    enc_emb = jax.random.normal(next(keys), (en_vocab, d_model), jnp.float32)
    dec_emb = jax.random.normal(next(keys), (kn_vocab, d_model), jnp.float32)
    w_final, b_final = lin(d_model, kn_out_vocab)

    return {'enc_layers': enc_layers, 'dec_layers': dec_layers,
            'enc_emb': enc_emb, 'dec_emb': dec_emb,
            'w_final': w_final, 'b_final': b_final}


# --------------------------------------------------------------------------
# Tokenization (python glue, mirrors SentenceEmbedding.batch_tokenize)
# --------------------------------------------------------------------------

def tokenize_batch(batch, lang_to_index, max_seq, start_token, end_token,
                   START, END, PAD):
    toks = []
    for sentence in batch:
        ids = [lang_to_index[ch] for ch in list(sentence)]
        if start_token:
            ids.insert(0, lang_to_index[START])
        if end_token:
            ids.append(lang_to_index[END])
        while len(ids) < max_seq:
            ids.append(lang_to_index[PAD])
        toks.append(ids)
    return jnp.array(toks, dtype=jnp.int32)


# --------------------------------------------------------------------------
# Main
# --------------------------------------------------------------------------

if __name__ == "__main__":
    # Small hyper-parameters consistent with the module.  NOTE: at this demo
    # scale every kernel is launch/lane-padding overhead bound (as flagged in
    # the review); the tiling logic targets real (>=128-lane) model sizes.
    d_model = 32
    ffn_hidden = 64
    num_heads = 4
    num_layers = 2
    max_seq = 8
    batch = 2

    START, END, PAD = "<s>", "</s>", "<pad>"
    english_to_index = {tok: i for i, tok in
                        enumerate([START, END, PAD] + list("abcdefgh "))}
    kannada_to_index = {tok: i for i, tok in
                        enumerate([START, END, PAD] + list("klmnopqr "))}
    kn_vocab_size = len(kannada_to_index)

    params = init_params(jax.random.PRNGKey(0), d_model, ffn_hidden, num_layers,
                         len(english_to_index), len(kannada_to_index), kn_vocab_size)

    # Example input sentences (character-level, fit inside max_seq).
    x_sentences = ["ab cd", "efg h"]
    y_sentences = ["kl mn", "opq r"]

    x_tokens = tokenize_batch(x_sentences, english_to_index, max_seq,
                              False, False, START, END, PAD)
    y_tokens = tokenize_batch(y_sentences, kannada_to_index, max_seq,
                              False, False, START, END, PAD)

    # Masks default to None (matches the PyTorch module's default arguments).
    fwd = jax.jit(lambda p, xt, yt: transformer_forward(
        p, xt, yt, None, None, None,
        num_heads=num_heads, d_model=d_model, max_seq=max_seq))

    out = fwd(params, x_tokens, y_tokens)
    jax.block_until_ready(out)
    assert out.shape == (batch, max_seq, kn_vocab_size)
    assert bool(jnp.all(jnp.isfinite(out)))
    print("KERNEL_OK")
</pallas_src>

<mosaic_0001>
module attributes {stable_mosaic.version = 11 : i64} {
  func.func @_linear_kernel(%arg0: i32, %arg1: i32, %arg2: i32, %arg3: memref<16x32xbf16, #tpu.memory_space<vmem>>, %arg4: memref<32x32xbf16, #tpu.memory_space<vmem>>, %arg5: memref<1x32xf32, #tpu.memory_space<vmem>>, %arg6: memref<16x32xbf16, #tpu.memory_space<vmem>>, %arg7: memref<16x32xf32, #tpu.memory_space<vmem>>) attributes {dimension_semantics = [#tpu.dimension_semantics<parallel>, #tpu.dimension_semantics<parallel>, #tpu.dimension_semantics<arbitrary>], iteration_bounds = array<i64: 1, 1, 1>, scalar_prefetch = 0 : i64, scratch_operands = 1 : i64, tpu.core_type = #tpu.core_type<tc>, window_params = [{transform_indices = @transform_0, window_bounds = array<i64: 16, 32>}, {transform_indices = @transform_1, window_bounds = array<i64: 32, 32>}, {transform_indices = @transform_2, window_bounds = array<i64: 1, 32>}, {transform_indices = @transform_3, window_bounds = array<i64: 16, 32>}]} {
    %c0_i32 = arith.constant 0 : i32
    %0 = arith.cmpi eq, %arg2, %c0_i32 : i32
    %1 = arith.extui %0 : i1 to i32
    %c0_i32_0 = arith.constant 0 : i32
    %2 = arith.cmpi ne, %1, %c0_i32_0 : i32
    scf.if %2 {
      %cst_10 = arith.constant 0.000000e+00 : f32
      %12 = vector.broadcast %cst_10 : f32 to vector<16x32xf32>
      %c0_11 = arith.constant 0 : index
      %c0_12 = arith.constant 0 : index
      %13 = vector.load %arg7[%c0_11, %c0_12] : memref<16x32xf32, #tpu.memory_space<vmem>>, vector<16x32xf32>
      tpu.vector_store %arg7[%c0_11, %c0_12], %12 {strides = array<i32>} : memref<16x32xf32, #tpu.memory_space<vmem>>, vector<16x32xf32>,
    } else {
    }
    %c0 = arith.constant 0 : index
    %c0_1 = arith.constant 0 : index
    %3 = vector.load %arg7[%c0, %c0_1] : memref<16x32xf32, #tpu.memory_space<vmem>>, vector<16x32xf32>
    %c0_2 = arith.constant 0 : index
    %c0_3 = arith.constant 0 : index
    %4 = vector.load %arg3[%c0_2, %c0_3] : memref<16x32xbf16, #tpu.memory_space<vmem>>, vector<16x32xbf16>
    %c0_4 = arith.constant 0 : index
    %c0_5 = arith.constant 0 : index
    %5 = vector.load %arg4[%c0_4, %c0_5] : memref<32x32xbf16, #tpu.memory_space<vmem>>, vector<32x32xbf16>
    %cst = arith.constant dense<0.000000e+00> : vector<16x32xf32>
    %6 = tpu.matmul %4, %5, %cst {dimension_numbers = #tpu.dot_dimension_numbers<[1], [0], [0], [1], [0, 0, 1, 1], [], []>} : vector<16x32xbf16>, vector<32x32xbf16>, vector<16x32xf32> -> vector<16x32xf32>
    %7 = arith.addf %3, %6 : vector<16x32xf32>
    %c0_6 = arith.constant 0 : index
    %c0_7 = arith.constant 0 : index
    %8 = vector.load %arg7[%c0_6, %c0_7] : memref<16x32xf32, #tpu.memory_space<vmem>>, vector<16x32xf32>
    tpu.vector_store %arg7[%c0_6, %c0_7], %7 {strides = array<i32>} : memref<16x32xf32, #tpu.memory_space<vmem>>, vector<16x32xf32>,
    %c0_i32_8 = arith.constant 0 : i32
    %9 = arith.cmpi eq, %arg2, %c0_i32_8 : i32
    %10 = arith.extui %9 : i1 to i32
    %c0_i32_9 = arith.constant 0 : i32
    %11 = arith.cmpi ne, %10, %c0_i32_9 : i32
    scf.if %11 {
      %c0_10 = arith.constant 0 : index
      %c0_11 = arith.constant 0 : index
      %12 = vector.load %arg7[%c0_10, %c0_11] : memref<16x32xf32, #tpu.memory_space<vmem>>, vector<16x32xf32>
      %c0_12 = arith.constant 0 : index
      %c0_13 = arith.constant 0 : index
      %13 = vector.load %arg5[%c0_12, %c0_13] : memref<1x32xf32, #tpu.memory_space<vmem>>, vector<1x32xf32>
      %14 = vector.broadcast %13 : vector<1x32xf32> to vector<16x32xf32>
      %15 = arith.addf %12, %14 : vector<16x32xf32>
      %16 = arith.truncf %15 : vector<16x32xf32> to vector<16x32xbf16>
      %c0_14 = arith.constant 0 : index
      %c0_15 = arith.constant 0 : index
      %17 = vector.load %arg6[%c0_14, %c0_15] : memref<16x32xbf16, #tpu.memory_space<vmem>>, vector<16x32xbf16>
      tpu.vector_store %arg6[%c0_14, %c0_15], %16 {strides = array<i32>} : memref<16x32xbf16, #tpu.memory_space<vmem>>, vector<16x32xbf16>,
    } else {
    }
    return
  }
  func.func @transform_0(%arg0: i32, %arg1: i32, %arg2: i32) -> (i32, i32) {
    %c0_i32 = arith.constant 0 : i32
    return %arg0, %arg2 : i32, i32
  }
  func.func @transform_1(%arg0: i32, %arg1: i32, %arg2: i32) -> (i32, i32) {
    %c0_i32 = arith.constant 0 : i32
    return %arg2, %arg1 : i32, i32
  }
  func.func @transform_2(%arg0: i32, %arg1: i32, %arg2: i32) -> (i32, i32) {
    %c0_i32 = arith.constant 0 : i32
    %c0_i32_0 = arith.constant 0 : i32
    return %c0_i32, %arg1 : i32, i32
  }
  func.func @transform_3(%arg0: i32, %arg1: i32, %arg2: i32) -> (i32, i32) {
    %c0_i32 = arith.constant 0 : i32
    return %arg0, %arg1 : i32, i32
  }
}

module attributes {stable_mosaic.version = 11 : i64} {
  func.func @_ln_kernel(%arg0: i32, %arg1: memref<16x32xbf16, #tpu.memory_space<vmem>>, %arg2: memref<1x32xf32, #tpu.memory_space<vmem>>, %arg3: memref<1x32xf32, #tpu.memory_space<vmem>>, %arg4: memref<16x32xbf16, #tpu.memory_space<vmem>>) attributes {dimension_semantics = [#tpu.dimension_semantics<parallel>], iteration_bounds = array<i64: 1>, scalar_prefetch = 0 : i64, scratch_operands = 0 : i64, tpu.core_type = #tpu.core_type<tc>, window_params = [{transform_indices = @transform_0, window_bounds = array<i64: 16, 32>}, {pipeline_mode = #tpu.pipeline_mode<synchronous>, transform_indices = @transform_1, window_bounds = array<i64: 1, 32>}, {pipeline_mode = #tpu.pipeline_mode<synchronous>, transform_indices = @transform_2, window_bounds = array<i64: 1, 32>}, {transform_indices = @transform_3, window_bounds = array<i64: 16, 32>}]} {
    %c0 = arith.constant 0 : index
    %c0_0 = arith.constant 0 : index
    %0 = vector.load %arg1[%c0, %c0_0] : memref<16x32xbf16, #tpu.memory_space<vmem>>, vector<16x32xbf16>
    %1 = arith.extf %0 : vector<16x32xbf16> to vector<16x32xf32>
    %cst = arith.constant dense<0.000000e+00> : vector<16xf32>
    %2 = vector.multi_reduction <add>, %1, %cst [1] : vector<16x32xf32> to vector<16xf32>
    %3 = vector.shape_cast %2 : vector<16xf32> to vector<16x1xf32>
    %cst_1 = arith.constant 3.200000e+01 : f32
    %4 = vector.broadcast %cst_1 : f32 to vector<16x1xf32>
    %5 = arith.divf %3, %4 : vector<16x1xf32>
    %6 = vector.broadcast %5 : vector<16x1xf32> to vector<16x32xf32>
    %7 = arith.subf %1, %6 : vector<16x32xf32>
    %8 = arith.mulf %7, %7 : vector<16x32xf32>
    %cst_2 = arith.constant dense<0.000000e+00> : vector<16xf32>
    %9 = vector.multi_reduction <add>, %8, %cst_2 [1] : vector<16x32xf32> to vector<16xf32>
    %10 = vector.shape_cast %9 : vector<16xf32> to vector<16x1xf32>
    %cst_3 = arith.constant 3.200000e+01 : f32
    %11 = vector.broadcast %cst_3 : f32 to vector<16x1xf32>
    %12 = arith.divf %10, %11 : vector<16x1xf32>
    %13 = vector.broadcast %5 : vector<16x1xf32> to vector<16x32xf32>
    %14 = arith.subf %1, %13 : vector<16x32xf32>
    %cst_4 = arith.constant 9.99999974E-6 : f32
    %15 = vector.broadcast %cst_4 : f32 to vector<16x1xf32>
    %16 = arith.addf %12, %15 : vector<16x1xf32>
    %17 = math.rsqrt %16 : vector<16x1xf32>
    %18 = vector.broadcast %17 : vector<16x1xf32> to vector<16x32xf32>
    %19 = arith.mulf %14, %18 : vector<16x32xf32>
    %c0_5 = arith.constant 0 : index
    %c0_6 = arith.constant 0 : index
    %20 = vector.load %arg2[%c0_5, %c0_6] : memref<1x32xf32, #tpu.memory_space<vmem>>, vector<1x32xf32>
    %21 = vector.broadcast %20 : vector<1x32xf32> to vector<16x32xf32>
    %22 = arith.mulf %21, %19 : vector<16x32xf32>
    %c0_7 = arith.constant 0 : index
    %c0_8 = arith.constant 0 : index
    %23 = vector.load %arg3[%c0_7, %c0_8] : memref<1x32xf32, #tpu.memory_space<vmem>>, vector<1x32xf32>
    %24 = vector.broadcast %23 : vector<1x32xf32> to vector<16x32xf32>
    %25 = arith.addf %22, %24 : vector<16x32xf32>
    %26 = arith.truncf %25 : vector<16x32xf32> to vector<16x32xbf16>
    %c0_9 = arith.constant 0 : index
    %c0_10 = arith.constant 0 : index
    %27 = vector.load %arg4[%c0_9, %c0_10] : memref<16x32xbf16, #tpu.memory_space<vmem>>, vector<16x32xbf16>
    tpu.vector_store %arg4[%c0_9, %c0_10], %26 {strides = array<i32>} : memref<16x32xbf16, #tpu.memory_space<vmem>>, vector<16x32xbf16>,
    return
  }
  func.func @transform_0(%arg0: i32) -> (i32, i32) {
    %c0_i32 = arith.constant 0 : i32
    %c0_i32_0 = arith.constant 0 : i32
    return %arg0, %c0_i32 : i32, i32
  }
  func.func @transform_1(%arg0: i32) -> (i32, i32) {
    %c0_i32 = arith.constant 0 : i32
    %c0_i32_0 = arith.constant 0 : i32
    %c0_i32_1 = arith.constant 0 : i32
    return %c0_i32, %c0_i32_0 : i32, i32
  }
  func.func @transform_2(%arg0: i32) -> (i32, i32) {
    %c0_i32 = arith.constant 0 : i32
    %c0_i32_0 = arith.constant 0 : i32
    %c0_i32_1 = arith.constant 0 : i32
    return %c0_i32, %c0_i32_0 : i32, i32
  }
  func.func @transform_3(%arg0: i32) -> (i32, i32) {
    %c0_i32 = arith.constant 0 : i32
    %c0_i32_0 = arith.constant 0 : i32
    return %arg0, %c0_i32 : i32, i32
  }
}

module attributes {stable_mosaic.version = 11 : i64} {
  func.func @kernel(%arg0: i32, %arg1: i32, %arg2: i32, %arg3: memref<1x8x32xbf16, #tpu.memory_space<vmem>>, %arg4: memref<1x8x32xbf16, #tpu.memory_space<vmem>>, %arg5: memref<1x8x32xbf16, #tpu.memory_space<vmem>>, %arg6: memref<1x8x32xbf16, #tpu.memory_space<vmem>>, %arg7: memref<4x8x1xf32, #tpu.memory_space<vmem>>, %arg8: memref<4x8x1xf32, #tpu.memory_space<vmem>>, %arg9: memref<4x8x8xf32, #tpu.memory_space<vmem>>) attributes {dimension_semantics = [#tpu.dimension_semantics<parallel>, #tpu.dimension_semantics<parallel>, #tpu.dimension_semantics<arbitrary>], iteration_bounds = array<i64: 2, 1, 1>, scalar_prefetch = 0 : i64, scratch_operands = 3 : i64, tpu.core_type = #tpu.core_type<tc>, window_params = [{transform_indices = @transform_0, window_bounds = array<i64: 1, 8, 32>}, {transform_indices = @transform_1, window_bounds = array<i64: 1, 8, 32>}, {transform_indices = @transform_2, window_bounds = array<i64: 1, 8, 32>}, {transform_indices = @transform_3, window_bounds = array<i64: 1, 8, 32>}]} {
    %c0_i32 = arith.constant 0 : i32
    %0 = arith.cmpi eq, %arg2, %c0_i32 : i32
    %1 = arith.extui %0 : i1 to i32
    %c0_i32_0 = arith.constant 0 : i32
    %2 = arith.cmpi ne, %1, %c0_i32_0 : i32
    scf.if %2 {
      %cst_99 = arith.constant -1.000000e+30 : f32
      %164 = vector.broadcast %cst_99 : f32 to vector<4x8x1xf32>
      %c0_100 = arith.constant 0 : index
      %c0_101 = arith.constant 0 : index
      %c0_102 = arith.constant 0 : index
      %165 = vector.load %arg7[%c0_100, %c0_101, %c0_102] : memref<4x8x1xf32, #tpu.memory_space<vmem>>, vector<4x8x1xf32>
      tpu.vector_store %arg7[%c0_100, %c0_101, %c0_102], %164 {strides = array<i32>} : memref<4x8x1xf32, #tpu.memory_space<vmem>>, vector<4x8x1xf32>,
      %cst_103 = arith.constant 0.000000e+00 : f32
      %166 = vector.broadcast %cst_103 : f32 to vector<4x8x1xf32>
      %c0_104 = arith.constant 0 : index
      %c0_105 = arith.constant 0 : index
      %c0_106 = arith.constant 0 : index
      %167 = vector.load %arg8[%c0_104, %c0_105, %c0_106] : memref<4x8x1xf32, #tpu.memory_space<vmem>>, vector<4x8x1xf32>
      tpu.vector_store %arg8[%c0_104, %c0_105, %c0_106], %166 {strides = array<i32>} : memref<4x8x1xf32, #tpu.memory_space<vmem>>, vector<4x8x1xf32>,
      %cst_107 = arith.constant 0.000000e+00 : f32
      %168 = vector.broadcast %cst_107 : f32 to vector<4x8x8xf32>
      %c0_108 = arith.constant 0 : index
      %c0_109 = arith.constant 0 : index
      %c0_110 = arith.constant 0 : index
      %169 = vector.load %arg9[%c0_108, %c0_109, %c0_110] : memref<4x8x8xf32, #tpu.memory_space<vmem>>, vector<4x8x8xf32>
      tpu.vector_store %arg9[%c0_108, %c0_109, %c0_110], %168 {strides = array<i32>} : memref<4x8x8xf32, #tpu.memory_space<vmem>>, vector<4x8x8xf32>,
    } else {
    }
    %c0 = arith.constant 0 : index
    %c0_1 = arith.constant 0 : index
    %c0_2 = arith.constant 0 : index
    %3 = vector.load %arg3[%c0, %c0_1, %c0_2] : memref<1x8x32xbf16, #tpu.memory_space<vmem>>, vector<1x8x32xbf16>
    %4 = vector.shape_cast %3 : vector<1x8x32xbf16> to vector<8x32xbf16>
    %c0_3 = arith.constant 0 : index
    %c0_4 = arith.constant 0 : index
    %c0_5 = arith.constant 0 : index
    %5 = vector.load %arg4[%c0_3, %c0_4, %c0_5] : memref<1x8x32xbf16, #tpu.memory_space<vmem>>, vector<1x8x32xbf16>
    %6 = vector.shape_cast %5 : vector<1x8x32xbf16> to vector<8x32xbf16>
    %c0_6 = arith.constant 0 : index
    %c0_7 = arith.constant 0 : index
    %c0_8 = arith.constant 0 : index
    %7 = vector.load %arg5[%c0_6, %c0_7, %c0_8] : memref<1x8x32xbf16, #tpu.memory_space<vmem>>, vector<1x8x32xbf16>
    %8 = vector.shape_cast %7 : vector<1x8x32xbf16> to vector<8x32xbf16>
    %9 = vector.extract_strided_slice %4 {offsets = [0, 0], sizes = [8, 8], strides = [1, 1]} : vector<8x32xbf16> to vector<8x8xbf16>
    %10 = vector.extract_strided_slice %6 {offsets = [0, 0], sizes = [8, 8], strides = [1, 1]} : vector<8x32xbf16> to vector<8x8xbf16>
    %11 = vector.extract_strided_slice %8 {offsets = [0, 0], sizes = [8, 8], strides = [1, 1]} : vector<8x32xbf16> to vector<8x8xbf16>
    %cst = arith.constant dense<0.000000e+00> : vector<8x8xf32>
    %12 = tpu.matmul %9, %10, %cst {dimension_numbers = #tpu.dot_dimension_numbers<[1], [1], [0], [0], [0, 0, 1, 0], [], []>} : vector<8x8xbf16>, vector<8x8xbf16>, vector<8x8xf32> -> vector<8x8xf32>
    %cst_9 = arith.constant 0.353553385 : f32
    %13 = vector.broadcast %cst_9 : f32 to vector<8x8xf32>
    %14 = arith.mulf %12, %13 : vector<8x8xf32>
    %c0_10 = arith.constant 0 : index
    %c0_11 = arith.constant 0 : index
    %c0_12 = arith.constant 0 : index
    %15 = vector.load %arg7[%c0_10, %c0_11, %c0_12] : memref<4x8x1xf32, #tpu.memory_space<vmem>>, vector<1x8x1xf32>
    %16 = vector.shape_cast %15 : vector<1x8x1xf32> to vector<8x1xf32>
    %cst_13 = arith.constant dense<0xFF800000> : vector<8xf32>
    %17 = vector.multi_reduction <maximumf>, %14, %cst_13 [1] : vector<8x8xf32> to vector<8xf32>
    %18 = vector.shape_cast %17 : vector<8xf32> to vector<8x1xf32>
    %19 = arith.maximumf %16, %18 : vector<8x1xf32>
    %20 = arith.subf %16, %19 : vector<8x1xf32>
    %21 = math.exp %20 : vector<8x1xf32>
    %22 = vector.broadcast %19 : vector<8x1xf32> to vector<8x8xf32>
    %23 = arith.subf %14, %22 : vector<8x8xf32>
    %24 = math.exp %23 : vector<8x8xf32>
    %c0_14 = arith.constant 0 : index
    %c0_15 = arith.constant 0 : index
    %c0_16 = arith.constant 0 : index
    %25 = vector.load %arg8[%c0_14, %c0_15, %c0_16] : memref<4x8x1xf32, #tpu.memory_space<vmem>>, vector<1x8x1xf32>
    %26 = vector.shape_cast %25 : vector<1x8x1xf32> to vector<8x1xf32>
    %27 = arith.mulf %21, %26 : vector<8x1xf32>
    %cst_17 = arith.constant dense<0.000000e+00> : vector<8xf32>
    %28 = vector.multi_reduction <add>, %24, %cst_17 [1] : vector<8x8xf32> to vector<8xf32>
    %29 = vector.shape_cast %28 : vector<8xf32> to vector<8x1xf32>
    %30 = arith.addf %27, %29 : vector<8x1xf32>
    %c0_18 = arith.constant 0 : index
    %c0_19 = arith.constant 0 : index
    %c0_20 = arith.constant 0 : index
    %31 = vector.load %arg8[%c0_18, %c0_19, %c0_20] : memref<4x8x1xf32, #tpu.memory_space<vmem>>, vector<1x8x1xf32>
    %32 = vector.shape_cast %31 : vector<1x8x1xf32> to vector<8x1xf32>
    %33 = vector.shape_cast %30 : vector<8x1xf32> to vector<1x8x1xf32>
    tpu.vector_store %arg8[%c0_18, %c0_19, %c0_20], %33 {strides = array<i32>} : memref<4x8x1xf32, #tpu.memory_space<vmem>>, vector<1x8x1xf32>,
    %c0_21 = arith.constant 0 : index
    %c0_22 = arith.constant 0 : index
    %c0_23 = arith.constant 0 : index
    %34 = vector.load %arg9[%c0_21, %c0_22, %c0_23] : memref<4x8x8xf32, #tpu.memory_space<vmem>>, vector<1x8x8xf32>
    %35 = vector.shape_cast %34 : vector<1x8x8xf32> to vector<8x8xf32>
    %36 = vector.broadcast %21 : vector<8x1xf32> to vector<8x8xf32>
    %37 = arith.mulf %36, %35 : vector<8x8xf32>
    %38 = arith.truncf %24 : vector<8x8xf32> to vector<8x8xbf16>
    %cst_24 = arith.constant dense<0.000000e+00> : vector<8x8xf32>
    %39 = tpu.matmul %38, %11, %cst_24 {dimension_numbers = #tpu.dot_dimension_numbers<[1], [0], [0], [1], [0, 0, 1, 1], [], []>} : vector<8x8xbf16>, vector<8x8xbf16>, vector<8x8xf32> -> vector<8x8xf32>
    %40 = arith.addf %37, %39 : vector<8x8xf32>
    %c0_25 = arith.constant 0 : index
    %c0_26 = arith.constant 0 : index
    %c0_27 = arith.constant 0 : index
    %41 = vector.load %arg9[%c0_25, %c0_26, %c0_27] : memref<4x8x8xf32, #tpu.memory_space<vmem>>, vector<1x8x8xf32>
    %42 = vector.shape_cast %41 : vector<1x8x8xf32> to vector<8x8xf32>
    %43 = vector.shape_cast %40 : vector<8x8xf32> to vector<1x8x8xf32>
    tpu.vector_store %arg9[%c0_25, %c0_26, %c0_27], %43 {strides = array<i32>} : memref<4x8x8xf32, #tpu.memory_space<vmem>>, vector<1x8x8xf32>,
    %c0_28 = arith.constant 0 : index
    %c0_29 = arith.constant 0 : index
    %c0_30 = arith.constant 0 : index
    %44 = vector.load %arg7[%c0_28, %c0_29, %c0_30] : memref<4x8x1xf32, #tpu.memory_space<vmem>>, vector<1x8x1xf32>
    %45 = vector.shape_cast %44 : vector<1x8x1xf32> to vector<8x1xf32>
    %46 = vector.shape_cast %19 : vector<8x1xf32> to vector<1x8x1xf32>
    tpu.vector_store %arg7[%c0_28, %c0_29, %c0_30], %46 {strides = array<i32>} : memref<4x8x1xf32, #tpu.memory_space<vmem>>, vector<1x8x1xf32>,
    %47 = vector.extract_strided_slice %4 {offsets = [0, 8], sizes = [8, 8], strides = [1, 1]} : vector<8x32xbf16> to vector<8x8xbf16>
    %48 = vector.extract_strided_slice %6 {offsets = [0, 8], sizes = [8, 8], strides = [1, 1]} : vector<8x32xbf16> to vector<8x8xbf16>
    %49 = vector.extract_strided_slice %8 {offsets = [0, 8], sizes = [8, 8], strides = [1, 1]} : vector<8x32xbf16> to vector<8x8xbf16>
    %cst_31 = arith.constant dense<0.000000e+00> : vector<8x8xf32>
    %50 = tpu.matmul %47, %48, %cst_31 {dimension_numbers = #tpu.dot_dimension_numbers<[1], [1], [0], [0], [0, 0, 1, 0], [], []>} : vector<8x8xbf16>, vector<8x8xbf16>, vector<8x8xf32> -> vector<8x8xf32>
    %cst_32 = arith.constant 0.353553385 : f32
    %51 = vector.broadcast %cst_32 : f32 to vector<8x8xf32>
    %52 = arith.mulf %50, %51 : vector<8x8xf32>
    %c1 = arith.constant 1 : index
    %c0_33 = arith.constant 0 : index
    %c0_34 = arith.constant 0 : index
    %53 = vector.load %arg7[%c1, %c0_33, %c0_34] : memref<4x8x1xf32, #tpu.memory_space<vmem>>, vector<1x8x1xf32>
    %54 = vector.shape_cast %53 : vector<1x8x1xf32> to vector<8x1xf32>
    %cst_35 = arith.constant dense<0xFF800000> : vector<8xf32>
    %55 = vector.multi_reduction <maximumf>, %52, %cst_35 [1] : vector<8x8xf32> to vector<8xf32>
    %56 = vector.shape_cast %55 : vector<8xf32> to vector<8x1xf32>
    %57 = arith.maximumf %54, %56 : vector<8x1xf32>
    %58 = arith.subf %54, %57 : vector<8x1xf32>
    %59 = math.exp %58 : vector<8x1xf32>
    %60 = vector.broadcast %57 : vector<8x1xf32> to vector<8x8xf32>
    %61 = arith.subf %52, %60 : vector<8x8xf32>
    %62 = math.exp %61 : vector<8x8xf32>
    %c1_36 = arith.constant 1 : index
    %c0_37 = arith.constant 0 : index
    %c0_38 = arith.constant 0 : index
    %63 = vector.load %arg8[%c1_36, %c0_37, %c0_38] : memref<4x8x1xf32, #tpu.memory_space<vmem>>, vector<1x8x1xf32>
    %64 = vector.shape_cast %63 : vector<1x8x1xf32> to vector<8x1xf32>
    %65 = arith.mulf %59, %64 : vector<8x1xf32>
    %cst_39 = arith.constant dense<0.000000e+00> : vector<8xf32>
    %66 = vector.multi_reduction <add>, %62, %cst_39 [1] : vector<8x8xf32> to vector<8xf32>
    %67 = vector.shape_cast %66 : vector<8xf32> to vector<8x1xf32>
    %68 = arith.addf %65, %67 : vector<8x1xf32>
    %c1_40 = arith.constant 1 : index
    %c0_41 = arith.constant 0 : index
    %c0_42 = arith.constant 0 : index
    %69 = vector.load %arg8[%c1_40, %c0_41, %c0_42] : memref<4x8x1xf32, #tpu.memory_space<vmem>>, vector<1x8x1xf32>
    %70 = vector.shape_cast %69 : vector<1x8x1xf32> to vector<8x1xf32>
    %71 = vector.shape_cast %68 : vector<8x1xf32> to vector<1x8x1xf32>
    tpu.vector_store %arg8[%c1_40, %c0_41, %c0_42], %71 {strides = array<i32>} : memref<4x8x1xf32, #tpu.memory_space<vmem>>, vector<1x8x1xf32>,
    %c1_43 = arith.constant 1 : index
    %c0_44 = arith.constant 0 : index
    %c0_45 = arith.constant 0 : index
    %72 = vector.load %arg9[%c1_43, %c0_44, %c0_45] : memref<4x8x8xf32, #tpu.memory_space<vmem>>, vector<1x8x8xf32>
    %73 = vector.shape_cast %72 : vector<1x8x8xf32> to vector<8x8xf32>
    %74 = vector.broadcast %59 : vector<8x1xf32> to vector<8x8xf32>
    %75 = arith.mulf %74, %73 : vector<8x8xf32>
    %76 = arith.truncf %62 : vector<8x8xf32> to vector<8x8xbf16>
    %cst_46 = arith.constant dense<0.000000e+00> : vector<8x8xf32>
    %77 = tpu.matmul %76, %49, %cst_46 {dimension_numbers = #tpu.dot_dimension_numbers<[1], [0], [0], [1], [0, 0, 1, 1], [], []>} : vector<8x8xbf16>, vector<8x8xbf16>, vector<8x8xf32> -> vector<8x8xf32>
    %78 = arith.addf %75, %77 : vector<8x8xf32>
    %c1_47 = arith.constant 1 : index
    %c0_48 = arith.constant 0 : index
    %c0_49 = arith.constant 0 : index
    %79 = vector.load %arg9[%c1_47, %c0_48, %c0_49] : memref<4x8x8xf32, #tpu.memory_space<vmem>>, vector<1x8x8xf32>
    %80 = vector.shape_cast %79 : vector<1x8x8xf32> to vector<8x8xf32>
    %81 = vector.shape_cast %78 : vector<8x8xf32> to vector<1x8x8xf32>
    tpu.vector_store %arg9[%c1_47, %c0_48, %c0_49], %81 {strides = array<i32>} : memref<4x8x8xf32, #tpu.memory_space<vmem>>, vector<1x8x8xf32>,
    %c1_50 = arith.constant 1 : index
    %c0_51 = arith.constant 0 : index
    %c0_52 = arith.constant 0 : index
    %82 = vector.load %arg7[%c1_50, %c0_51, %c0_52] : memref<4x8x1xf32, #tpu.memory_space<vmem>>, vector<1x8x1xf32>
    %83 = vector.shape_cast %82 : vector<1x8x1xf32> to vector<8x1xf32>
    %84 = vector.shape_cast %57 : vector<8x1xf32> to vector<1x8x1xf32>
    tpu.vector_store %arg7[%c1_50, %c0_51, %c0_52], %84 {strides = array<i32>} : memref<4x8x1xf32, #tpu.memory_space<vmem>>, vector<1x8x1xf32>,
    %85 = vector.extract_strided_slice %4 {offsets = [0, 16], sizes = [8, 8], strides = [1, 1]} : vector<8x32xbf16> to vector<8x8xbf16>
    %86 = vector.extract_strided_slice %6 {offsets = [0, 16], sizes = [8, 8], strides = [1, 1]} : vector<8x32xbf16> to vector<8x8xbf16>
    %87 = vector.extract_strided_slice %8 {offsets = [0, 16], sizes = [8, 8], strides = [1, 1]} : vector<8x32xbf16> to vector<8x8xbf16>
    %cst_53 = arith.constant dense<0.000000e+00> : vector<8x8xf32>
    %88 = tpu.matmul %85, %86, %cst_53 {dimension_numbers = #tpu.dot_dimension_numbers<[1], [1], [0], [0], [0, 0, 1, 0], [], []>} : vector<8x8xbf16>, vector<8x8xbf16>, vector<8x8xf32> -> vector<8x8xf32>
    %cst_54 = arith.constant 0.353553385 : f32
    %89 = vector.broadcast %cst_54 : f32 to vector<8x8xf32>
    %90 = arith.mulf %88, %89 : vector<8x8xf32>
    %c2 = arith.constant 2 : index
    %c0_55 = arith.constant 0 : index
    %c0_56 = arith.constant 0 : index
    %91 = vector.load %arg7[%c2, %c0_55, %c0_56] : memref<4x8x1xf32, #tpu.memory_space<vmem>>, vector<1x8x1xf32>
    %92 = vector.shape_cast %91 : vector<1x8x1xf32> to vector<8x1xf32>
    %cst_57 = arith.constant dense<0xFF800000> : vector<8xf32>
    %93 = vector.multi_reduction <maximumf>, %90, %cst_57 [1] : vector<8x8xf32> to vector<8xf32>
    %94 = vector.shape_cast %93 : vector<8xf32> to vector<8x1xf32>
    %95 = arith.maximumf %92, %94 : vector<8x1xf32>
    %96 = arith.subf %92, %95 : vector<8x1xf32>
    %97 = math.exp %96 : vector<8x1xf32>
    %98 = vector.broadcast %95 : vector<8x1xf32> to vector<8x8xf32>
    %99 = arith.subf %90, %98 : vector<8x8xf32>
    %100 = math.exp %99 : vector<8x8xf32>
    %c2_58 = arith.constant 2 : index
    %c0_59 = arith.constant 0 : index
    %c0_60 = arith.constant 0 : index
    %101 = vector.load %arg8[%c2_58, %c0_59, %c0_60] : memref<4x8x1xf32, #tpu.memory_space<vmem>>, vector<1x8x1xf32>
    %102 = vector.shape_cast %101 : vector<1x8x1xf32> to vector<8x1xf32>
    %103 = arith.mulf %97, %102 : vector<8x1xf32>
    %cst_61 = arith.constant dense<0.000000e+00> : vector<8xf32>
    %104 = vector.multi_reduction <add>, %100, %cst_61 [1] : vector<8x8xf32> to vector<8xf32>
    %105 = vector.shape_cast %104 : vector<8xf32> to vector<8x1xf32>
    %106 = arith.addf %103, %105 : vector<8x1xf32>
    %c2_62 = arith.constant 2 : index
    %c0_63 = arith.constant 0 : index
    %c0_64 = arith.constant 0 : index
    %107 = vector.load %arg8[%c2_62, %c0_63, %c0_64] : memref<4x8x1xf32, #tpu.memory_space<vmem>>, vector<1x8x1xf32>
    %108 = vector.shape_cast %107 : vector<1x8x1xf32> to vector<8x1xf32>
    %109 = vector.shape_cast %106 : vector<8x1xf32> to vector<1x8x1xf32>
    tpu.vector_store %arg8[%c2_62, %c0_63, %c0_64], %109 {strides = array<i32>} : memref<4x8x1xf32, #tpu.memory_space<vmem>>, vector<1x8x1xf32>,
    %c2_65 = arith.constant 2 : index
    %c0_66 = arith.constant 0 : index
    %c0_67 = arith.constant 0 : index
    %110 = vector.load %arg9[%c2_65, %c0_66, %c0_67] : memref<4x8x8xf32, #tpu.memory_space<vmem>>, vector<1x8x8xf32>
    %111 = vector.shape_cast %110 : vector<1x8x8xf32> to vector<8x8xf32>
    %112 = vector.broadcast %97 : vector<8x1xf32> to vector<8x8xf32>
    %113 = arith.mulf %112, %111 : vector<8x8xf32>
    %114 = arith.truncf %100 : vector<8x8xf32> to vector<8x8xbf16>
    %cst_68 = arith.constant dense<0.000000e+00> : vector<8x8xf32>
    %115 = tpu.matmul %114, %87, %cst_68 {dimension_numbers = #tpu.dot_dimension_numbers<[1], [0], [0], [1], [0, 0, 1, 1], [], []>} : vector<8x8xbf16>, vector<8x8xbf16>, vector<8x8xf32> -> vector<8x8xf32>
    %116 = arith.addf %113, %115 : vector<8x8xf32>
    %c2_69 = arith.constant 2 : index
    %c0_70 = arith.constant 0 : index
    %c0_71 = arith.constant 0 : index
    %117 = vector.load %arg9[%c2_69, %c0_70, %c0_71] : memref<4x8x8xf32, #tpu.memory_space<vmem>>, vector<1x8x8xf32>
    %118 = vector.shape_cast %117 : vector<1x8x8xf32> to vector<8x8xf32>
    %119 = vector.shape_cast %116 : vector<8x8xf32> to vector<1x8x8xf32>
    tpu.vector_store %arg9[%c2_69, %c0_70, %c0_71], %119 {strides = array<i32>} : memref<4x8x8xf32, #tpu.memory_space<vmem>>, vector<1x8x8xf32>,
    %c2_72 = arith.constant 2 : index
    %c0_73 = arith.constant 0 : index
    %c0_74 = arith.constant 0 : index
    %120 = vector.load %arg7[%c2_72, %c0_73, %c0_74] : memref<4x8x1xf32, #tpu.memory_space<vmem>>, vector<1x8x1xf32>
    %121 = vector.shape_cast %120 : vector<1x8x1xf32> to vector<8x1xf32>
    %122 = vector.shape_cast %95 : vector<8x1xf32> to vector<1x8x1xf32>
    tpu.vector_store %arg7[%c2_72, %c0_73, %c0_74], %122 {strides = array<i32>} : memref<4x8x1xf32, #tpu.memory_space<vmem>>, vector<1x8x1xf32>,
    %123 = vector.extract_strided_slice %4 {offsets = [0, 24], sizes = [8, 8], strides = [1, 1]} : vector<8x32xbf16> to vector<8x8xbf16>
    %124 = vector.extract_strided_slice %6 {offsets = [0, 24], sizes = [8, 8], strides = [1, 1]} : vector<8x32xbf16> to vector<8x8xbf16>
    %125 = vector.extract_strided_slice %8 {offsets = [0, 24], sizes = [8, 8], strides = [1, 1]} : vector<8x32xbf16> to vector<8x8xbf16>
    %cst_75 = arith.constant dense<0.000000e+00> : vector<8x8xf32>
    %126 = tpu.matmul %123, %124, %cst_75 {dimension_numbers = #tpu.dot_dimension_numbers<[1], [1], [0], [0], [0, 0, 1, 0], [], []>} : vector<8x8xbf16>, vector<8x8xbf16>, vector<8x8xf32> -> vector<8x8xf32>
    %cst_76 = arith.constant 0.353553385 : f32
    %127 = vector.broadcast %cst_76 : f32 to vector<8x8xf32>
    %128 = arith.mulf %126, %127 : vector<8x8xf32>
    %c3 = arith.constant 3 : index
    %c0_77 = arith.constant 0 : index
    %c0_78 = arith.constant 0 : index
    %129 = vector.load %arg7[%c3, %c0_77, %c0_78] : memref<4x8x1xf32, #tpu.memory_space<vmem>>, vector<1x8x1xf32>
    %130 = vector.shape_cast %129 : vector<1x8x1xf32> to vector<8x1xf32>
    %cst_79 = arith.constant dense<0xFF800000> : vector<8xf32>
    %131 = vector.multi_reduction <maximumf>, %128, %cst_79 [1] : vector<8x8xf32> to vector<8xf32>
    %132 = vector.shape_cast %131 : vector<8xf32> to vector<8x1xf32>
    %133 = arith.maximumf %130, %132 : vector<8x1xf32>
    %134 = arith.subf %130, %133 : vector<8x1xf32>
    %135 = math.exp %134 : vector<8x1xf32>
    %136 = vector.broadcast %133 : vector<8x1xf32> to vector<8x8xf32>
    %137 = arith.subf %128, %136 : vector<8x8xf32>
    %138 = math.exp %137 : vector<8x8xf32>
    %c3_80 = arith.constant 3 : index
    %c0_81 = arith.constant 0 : index
    %c0_82 = arith.constant 0 : index
    %139 = vector.load %arg8[%c3_80, %c0_81, %c0_82] : memref<4x8x1xf32, #tpu.memory_space<vmem>>, vector<1x8x1xf32>
    %140 = vector.shape_cast %139 : vector<1x8x1xf32> to vector<8x1xf32>
    %141 = arith.mulf %135, %140 : vector<8x1xf32>
    %cst_83 = arith.constant dense<0.000000e+00> : vector<8xf32>
    %142 = vector.multi_reduction <add>, %138, %cst_83 [1] : vector<8x8xf32> to vector<8xf32>
    %143 = vector.shape_cast %142 : vector<8xf32> to vector<8x1xf32>
    %144 = arith.addf %141, %143 : vector<8x1xf32>
    %c3_84 = arith.constant 3 : index
    %c0_85 = arith.constant 0 : index
    %c0_86 = arith.constant 0 : index
    %145 = vector.load %arg8[%c3_84, %c0_85, %c0_86] : memref<4x8x1xf32, #tpu.memory_space<vmem>>, vector<1x8x1xf32>
    %146 = vector.shape_cast %145 : vector<1x8x1xf32> to vector<8x1xf32>
    %147 = vector.shape_cast %144 : vector<8x1xf32> to vector<1x8x1xf32>
    tpu.vector_store %arg8[%c3_84, %c0_85, %c0_86], %147 {strides = array<i32>} : memref<4x8x1xf32, #tpu.memory_space<vmem>>, vector<1x8x1xf32>,
    %c3_87 = arith.constant 3 : index
    %c0_88 = arith.constant 0 : index
    %c0_89 = arith.constant 0 : index
    %148 = vector.load %arg9[%c3_87, %c0_88, %c0_89] : memref<4x8x8xf32, #tpu.memory_space<vmem>>, vector<1x8x8xf32>
    %149 = vector.shape_cast %148 : vector<1x8x8xf32> to vector<8x8xf32>
    %150 = vector.broadcast %135 : vector<8x1xf32> to vector<8x8xf32>
    %151 = arith.mulf %150, %149 : vector<8x8xf32>
    %152 = arith.truncf %138 : vector<8x8xf32> to vector<8x8xbf16>
    %cst_90 = arith.constant dense<0.000000e+00> : vector<8x8xf32>
    %153 = tpu.matmul %152, %125, %cst_90 {dimension_numbers = #tpu.dot_dimension_numbers<[1], [0], [0], [1], [0, 0, 1, 1], [], []>} : vector<8x8xbf16>, vector<8x8xbf16>, vector<8x8xf32> -> vector<8x8xf32>
    %154 = arith.addf %151, %153 : vector<8x8xf32>
    %c3_91 = arith.constant 3 : index
    %c0_92 = arith.constant 0 : index
    %c0_93 = arith.constant 0 : index
    %155 = vector.load %arg9[%c3_91, %c0_92, %c0_93] : memref<4x8x8xf32, #tpu.memory_space<vmem>>, vector<1x8x8xf32>
    %156 = vector.shape_cast %155 : vector<1x8x8xf32> to vector<8x8xf32>
    %157 = vector.shape_cast %154 : vector<8x8xf32> to vector<1x8x8xf32>
    tpu.vector_store %arg9[%c3_91, %c0_92, %c0_93], %157 {strides = array<i32>} : memref<4x8x8xf32, #tpu.memory_space<vmem>>, vector<1x8x8xf32>,
    %c3_94 = arith.constant 3 : index
    %c0_95 = arith.constant 0 : index
    %c0_96 = arith.constant 0 : index
    %158 = vector.load %arg7[%c3_94, %c0_95, %c0_96] : memref<4x8x1xf32, #tpu.memory_space<vmem>>, vector<1x8x1xf32>
    %159 = vector.shape_cast %158 : vector<1x8x1xf32> to vector<8x1xf32>
    %160 = vector.shape_cast %133 : vector<8x1xf32> to vector<1x8x1xf32>
    tpu.vector_store %arg7[%c3_94, %c0_95, %c0_96], %160 {strides = array<i32>} : memref<4x8x1xf32, #tpu.memory_space<vmem>>, vector<1x8x1xf32>,
    %c0_i32_97 = arith.constant 0 : i32
    %161 = arith.cmpi eq, %arg2, %c0_i32_97 : i32
    %162 = arith.extui %161 : i1 to i32
    %c0_i32_98 = arith.constant 0 : i32
    %163 = arith.cmpi ne, %162, %c0_i32_98 : i32
    scf.if %163 {
      %c0_99 = arith.constant 0 : index
      %c0_100 = arith.constant 0 : index
      %c0_101 = arith.constant 0 : index
      %164 = vector.load %arg8[%c0_99, %c0_100, %c0_101] : memref<4x8x1xf32, #tpu.memory_space<vmem>>, vector<1x8x1xf32>
      %165 = vector.shape_cast %164 : vector<1x8x1xf32> to vector<8x1xf32>
      %166 = tpu.reciprocal %165 {approx = true} : vector<8x1xf32> -> vector<8x1xf32>
      %c0_102 = arith.constant 0 : index
      %c0_103 = arith.constant 0 : index
      %c0_104 = arith.constant 0 : index
      %167 = vector.load %arg9[%c0_102, %c0_103, %c0_104] : memref<4x8x8xf32, #tpu.memory_space<vmem>>, vector<1x8x8xf32>
      %168 = vector.shape_cast %167 : vector<1x8x8xf32> to vector<8x8xf32>
      %169 = vector.broadcast %166 : vector<8x1xf32> to vector<8x8xf32>
      %170 = arith.mulf %168, %169 : vector<8x8xf32>
      %171 = arith.truncf %170 : vector<8x8xf32> to vector<8x8xbf16>
      %c0_105 = arith.constant 0 : index
      %c0_106 = arith.constant 0 : index
      %c0_107 = arith.constant 0 : index
      %172 = vector.load %arg6[%c0_105, %c0_106, %c0_107] : memref<1x8x32xbf16, #tpu.memory_space<vmem>>, vector<1x8x8xbf16>
      %173 = vector.shape_cast %172 : vector<1x8x8xbf16> to vector<8x8xbf16>
      %174 = vector.shape_cast %171 : vector<8x8xbf16> to vector<1x8x8xbf16>
      tpu.vector_store %arg6[%c0_105, %c0_106, %c0_107], %174 {strides = array<i32>} : memref<1x8x32xbf16, #tpu.memory_space<vmem>>, vector<1x8x8xbf16>,
      %c1_108 = arith.constant 1 : index
      %c0_109 = arith.constant 0 : index
      %c0_110 = arith.constant 0 : index
      %175 = vector.load %arg8[%c1_108, %c0_109, %c0_110] : memref<4x8x1xf32, #tpu.memory_space<vmem>>, vector<1x8x1xf32>
      %176 = vector.shape_cast %175 : vector<1x8x1xf32> to vector<8x1xf32>
      %177 = tpu.reciprocal %176 {approx = true} : vector<8x1xf32> -> vector<8x1xf32>
      %c1_111 = arith.constant 1 : index
      %c0_112 = arith.constant 0 : index
      %c0_113 = arith.constant 0 : index
      %178 = vector.load %arg9[%c1_111, %c0_112, %c0_113] : memref<4x8x8xf32, #tpu.memory_space<vmem>>, vector<1x8x8xf32>
      %179 = vector.shape_cast %178 : vector<1x8x8xf32> to vector<8x8xf32>
      %180 = vector.broadcast %177 : vector<8x1xf32> to vector<8x8xf32>
      %181 = arith.mulf %179, %180 : vector<8x8xf32>
      %182 = arith.truncf %181 : vector<8x8xf32> to vector<8x8xbf16>
      %c0_114 = arith.constant 0 : index
      %c0_115 = arith.constant 0 : index
      %c8 = arith.constant 8 : index
      %183 = vector.load %arg6[%c0_114, %c0_115, %c8] : memref<1x8x32xbf16, #tpu.memory_space<vmem>>, vector<1x8x8xbf16>
      %184 = vector.shape_cast %183 : vector<1x8x8xbf16> to vector<8x8xbf16>
      %185 = vector.shape_cast %182 : vector<8x8xbf16> to vector<1x8x8xbf16>
      tpu.vector_store %arg6[%c0_114, %c0_115, %c8], %185 {strides = array<i32>} : memref<1x8x32xbf16, #tpu.memory_space<vmem>>, vector<1x8x8xbf16>,
      %c2_116 = arith.constant 2 : index
      %c0_117 = arith.constant 0 : index
      %c0_118 = arith.constant 0 : index
      %186 = vector.load %arg8[%c2_116, %c0_117, %c0_118] : memref<4x8x1xf32, #tpu.memory_space<vmem>>, vector<1x8x1xf32>
      %187 = vector.shape_cast %186 : vector<1x8x1xf32> to vector<8x1xf32>
      %188 = tpu.reciprocal %187 {approx = true} : vector<8x1xf32> -> vector<8x1xf32>
      %c2_119 = arith.constant 2 : index
      %c0_120 = arith.constant 0 : index
      %c0_121 = arith.constant 0 : index
      %189 = vector.load %arg9[%c2_119, %c0_120, %c0_121] : memref<4x8x8xf32, #tpu.memory_space<vmem>>, vector<1x8x8xf32>
      %190 = vector.shape_cast %189 : vector<1x8x8xf32> to vector<8x8xf32>
      %191 = vector.broadcast %188 : vector<8x1xf32> to vector<8x8xf32>
      %192 = arith.mulf %190, %191 : vector<8x8xf32>
      %193 = arith.truncf %192 : vector<8x8xf32> to vector<8x8xbf16>
      %c0_122 = arith.constant 0 : index
      %c0_123 = arith.constant 0 : index
      %c16 = arith.constant 16 : index
      %194 = vector.load %arg6[%c0_122, %c0_123, %c16] : memref<1x8x32xbf16, #tpu.memory_space<vmem>>, vector<1x8x8xbf16>
      %195 = vector.shape_cast %194 : vector<1x8x8xbf16> to vector<8x8xbf16>
      %196 = vector.shape_cast %193 : vector<8x8xbf16> to vector<1x8x8xbf16>
      tpu.vector_store %arg6[%c0_122, %c0_123, %c16], %196 {strides = array<i32>} : memref<1x8x32xbf16, #tpu.memory_space<vmem>>, vector<1x8x8xbf16>,
      %c3_124 = arith.constant 3 : index
      %c0_125 = arith.constant 0 : index
      %c0_126 = arith.constant 0 : index
      %197 = vector.load %arg8[%c3_124, %c0_125, %c0_126] : memref<4x8x1xf32, #tpu.memory_space<vmem>>, vector<1x8x1xf32>
      %198 = vector.shape_cast %197 : vector<1x8x1xf32> to vector<8x1xf32>
      %199 = tpu.reciprocal %198 {approx = true} : vector<8x1xf32> -> vector<8x1xf32>
      %c3_127 = arith.constant 3 : index
      %c0_128 = arith.constant 0 : index
      %c0_129 = arith.constant 0 : index
      %200 = vector.load %arg9[%c3_127, %c0_128, %c0_129] : memref<4x8x8xf32, #tpu.memory_space<vmem>>, vector<1x8x8xf32>
      %201 = vector.shape_cast %200 : vector<1x8x8xf32> to vector<8x8xf32>
      %202 = vector.broadcast %199 : vector<8x1xf32> to vector<8x8xf32>
      %203 = arith.mulf %201, %202 : vector<8x8xf32>
      %204 = arith.truncf %203 : vector<8x8xf32> to vector<8x8xbf16>
      %c0_130 = arith.constant 0 : index
      %c0_131 = arith.constant 0 : index
      %c24 = arith.constant 24 : index
      %205 = vector.load %arg6[%c0_130, %c0_131, %c24] : memref<1x8x32xbf16, #tpu.memory_space<vmem>>, vector<1x8x8xbf16>
      %206 = vector.shape_cast %205 : vector<1x8x8xbf16> to vector<8x8xbf16>
      %207 = vector.shape_cast %204 : vector<8x8xbf16> to vector<1x8x8xbf16>
      tpu.vector_store %arg6[%c0_130, %c0_131, %c24], %207 {strides = array<i32>} : memref<1x8x32xbf16, #tpu.memory_space<vmem>>, vector<1x8x8xbf16>,
    } else {
    }
    return
  }
  func.func @transform_0(%arg0: i32, %arg1: i32, %arg2: i32) -> (i32, i32, i32) {
    %c0_i32 = arith.constant 0 : i32
    %c0_i32_0 = arith.constant 0 : i32
    return %arg0, %arg1, %c0_i32 : i32, i32, i32
  }
  func.func @transform_1(%arg0: i32, %arg1: i32, %arg2: i32) -> (i32, i32, i32) {
    %c0_i32 = arith.constant 0 : i32
    %c0_i32_0 = arith.constant 0 : i32
    return %arg0, %arg2, %c0_i32 : i32, i32, i32
  }
  func.func @transform_2(%arg0: i32, %arg1: i32, %arg2: i32) -> (i32, i32, i32) {
    %c0_i32 = arith.constant 0 : i32
    %c0_i32_0 = arith.constant 0 : i32
    return %arg0, %arg2, %c0_i32 : i32, i32, i32
  }
  func.func @transform_3(%arg0: i32, %arg1: i32, %arg2: i32) -> (i32, i32, i32) {
    %c0_i32 = arith.constant 0 : i32
    %c0_i32_0 = arith.constant 0 : i32
    return %arg0, %arg1, %c0_i32 : i32, i32, i32
  }
}

module attributes {stable_mosaic.version = 11 : i64} {
  func.func @_linear_kernel(%arg0: i32, %arg1: i32, %arg2: i32, %arg3: memref<16x32xbf16, #tpu.memory_space<vmem>>, %arg4: memref<32x32xbf16, #tpu.memory_space<vmem>>, %arg5: memref<1x32xf32, #tpu.memory_space<vmem>>, %arg6: memref<16x32xbf16, #tpu.memory_space<vmem>>, %arg7: memref<16x32xbf16, #tpu.memory_space<vmem>>, %arg8: memref<16x32xf32, #tpu.memory_space<vmem>>) attributes {dimension_semantics = [#tpu.dimension_semantics<parallel>, #tpu.dimension_semantics<parallel>, #tpu.dimension_semantics<arbitrary>], iteration_bounds = array<i64: 1, 1, 1>, scalar_prefetch = 0 : i64, scratch_operands = 1 : i64, tpu.core_type = #tpu.core_type<tc>, window_params = [{transform_indices = @transform_0, window_bounds = array<i64: 16, 32>}, {transform_indices = @transform_1, window_bounds = array<i64: 32, 32>}, {transform_indices = @transform_2, window_bounds = array<i64: 1, 32>}, {transform_indices = @transform_3, window_bounds = array<i64: 16, 32>}, {transform_indices = @transform_4, window_bounds = array<i64: 16, 32>}]} {
    %c0_i32 = arith.constant 0 : i32
    %0 = arith.cmpi eq, %arg2, %c0_i32 : i32
    %1 = arith.extui %0 : i1 to i32
    %c0_i32_0 = arith.constant 0 : i32
    %2 = arith.cmpi ne, %1, %c0_i32_0 : i32
    scf.if %2 {
      %cst_10 = arith.constant 0.000000e+00 : f32
      %12 = vector.broadcast %cst_10 : f32 to vector<16x32xf32>
      %c0_11 = arith.constant 0 : index
      %c0_12 = arith.constant 0 : index
      %13 = vector.load %arg8[%c0_11, %c0_12] : memref<16x32xf32, #tpu.memory_space<vmem>>, vector<16x32xf32>
      tpu.vector_store %arg8[%c0_11, %c0_12], %12 {strides = array<i32>} : memref<16x32xf32, #tpu.memory_space<vmem>>, vector<16x32xf32>,
    } else {
    }
    %c0 = arith.constant 0 : index
    %c0_1 = arith.constant 0 : index
    %3 = vector.load %arg8[%c0, %c0_1] : memref<16x32xf32, #tpu.memory_space<vmem>>, vector<16x32xf32>
    %c0_2 = arith.constant 0 : index
    %c0_3 = arith.constant 0 : index
    %4 = vector.load %arg3[%c0_2, %c0_3] : memref<16x32xbf16, #tpu.memory_space<vmem>>, vector<16x32xbf16>
    %c0_4 = arith.constant 0 : index
    %c0_5 = arith.constant 0 : index
    %5 = vector.load %arg4[%c0_4, %c0_5] : memref<32x32xbf16, #tpu.memory_space<vmem>>, vector<32x32xbf16>
    %cst = arith.constant dense<0.000000e+00> : vector<16x32xf32>
    %6 = tpu.matmul %4, %5, %cst {dimension_numbers = #tpu.dot_dimension_numbers<[1], [0], [0], [1], [0, 0, 1, 1], [], []>} : vector<16x32xbf16>, vector<32x32xbf16>, vector<16x32xf32> -> vector<16x32xf32>
    %7 = arith.addf %3, %6 : vector<16x32xf32>
    %c0_6 = arith.constant 0 : index
    %c0_7 = arith.constant 0 : index
    %8 = vector.load %arg8[%c0_6, %c0_7] : memref<16x32xf32, #tpu.memory_space<vmem>>, vector<16x32xf32>
    tpu.vector_store %arg8[%c0_6, %c0_7], %7 {strides = array<i32>} : memref<16x32xf32, #tpu.memory_space<vmem>>, vector<16x32xf32>,
    %c0_i32_8 = arith.constant 0 : i32
    %9 = arith.cmpi eq, %arg2, %c0_i32_8 : i32
    %10 = arith.extui %9 : i1 to i32
    %c0_i32_9 = arith.constant 0 : i32
    %11 = arith.cmpi ne, %10, %c0_i32_9 : i32
    scf.if %11 {
      %c0_10 = arith.constant 0 : index
      %c0_11 = arith.constant 0 : index
      %12 = vector.load %arg8[%c0_10, %c0_11] : memref<16x32xf32, #tpu.memory_space<vmem>>, vector<16x32xf32>
      %c0_12 = arith.constant 0 : index
      %c0_13 = arith.constant 0 : index
      %13 = vector.load %arg5[%c0_12, %c0_13] : memref<1x32xf32, #tpu.memory_space<vmem>>, vector<1x32xf32>
      %14 = vector.broadcast %13 : vector<1x32xf32> to vector<16x32xf32>
      %15 = arith.addf %12, %14 : vector<16x32xf32>
      %c0_14 = arith.constant 0 : index
      %c0_15 = arith.constant 0 : index
      %16 = vector.load %arg6[%c0_14, %c0_15] : memref<16x32xbf16, #tpu.memory_space<vmem>>, vector<16x32xbf16>
      %17 = arith.extf %16 : vector<16x32xbf16> to vector<16x32xf32>
      %18 = arith.addf %15, %17 : vector<16x32xf32>
      %19 = arith.truncf %18 : vector<16x32xf32> to vector<16x32xbf16>
      %c0_16 = arith.constant 0 : index
      %c0_17 = arith.constant 0 : index
      %20 = vector.load %arg7[%c0_16, %c0_17] : memref<16x32xbf16, #tpu.memory_space<vmem>>, vector<16x32xbf16>
      tpu.vector_store %arg7[%c0_16, %c0_17], %19 {strides = array<i32>} : memref<16x32xbf16, #tpu.memory_space<vmem>>, vector<16x32xbf16>,
    } else {
    }
    return
  }
  func.func @transform_0(%arg0: i32, %arg1: i32, %arg2: i32) -> (i32, i32) {
    %c0_i32 = arith.constant 0 : i32
    return %arg0, %arg2 : i32, i32
  }
  func.func @transform_1(%arg0: i32, %arg1: i32, %arg2: i32) -> (i32, i32) {
    %c0_i32 = arith.constant 0 : i32
    return %arg2, %arg1 : i32, i32
  }
  func.func @transform_2(%arg0: i32, %arg1: i32, %arg2: i32) -> (i32, i32) {
    %c0_i32 = arith.constant 0 : i32
    %c0_i32_0 = arith.constant 0 : i32
    return %c0_i32, %arg1 : i32, i32
  }
  func.func @transform_3(%arg0: i32, %arg1: i32, %arg2: i32) -> (i32, i32) {
    %c0_i32 = arith.constant 0 : i32
    return %arg0, %arg1 : i32, i32
  }
  func.func @transform_4(%arg0: i32, %arg1: i32, %arg2: i32) -> (i32, i32) {
    %c0_i32 = arith.constant 0 : i32
    return %arg0, %arg1 : i32, i32
  }
}

module attributes {stable_mosaic.version = 11 : i64} {
  func.func @_ffn_kernel(%arg0: i32, %arg1: i32, %arg2: memref<16x32xbf16, #tpu.memory_space<vmem>>, %arg3: memref<32x64xbf16, #tpu.memory_space<vmem>>, %arg4: memref<1x64xf32, #tpu.memory_space<vmem>>, %arg5: memref<64x32xbf16, #tpu.memory_space<vmem>>, %arg6: memref<1x32xf32, #tpu.memory_space<vmem>>, %arg7: memref<16x32xbf16, #tpu.memory_space<vmem>>, %arg8: memref<16x32xbf16, #tpu.memory_space<vmem>>, %arg9: memref<16x32xf32, #tpu.memory_space<vmem>>) attributes {dimension_semantics = [#tpu.dimension_semantics<parallel>, #tpu.dimension_semantics<arbitrary>], iteration_bounds = array<i64: 1, 1>, scalar_prefetch = 0 : i64, scratch_operands = 1 : i64, tpu.core_type = #tpu.core_type<tc>, window_params = [{transform_indices = @transform_0, window_bounds = array<i64: 16, 32>}, {transform_indices = @transform_1, window_bounds = array<i64: 32, 64>}, {transform_indices = @transform_2, window_bounds = array<i64: 1, 64>}, {transform_indices = @transform_3, window_bounds = array<i64: 64, 32>}, {pipeline_mode = #tpu.pipeline_mode<synchronous>, transform_indices = @transform_4, window_bounds = array<i64: 1, 32>}, {transform_indices = @transform_5, window_bounds = array<i64: 16, 32>}, {transform_indices = @transform_6, window_bounds = array<i64: 16, 32>}]} {
    %c0_i32 = arith.constant 0 : i32
    %0 = arith.cmpi eq, %arg1, %c0_i32 : i32
    %1 = arith.extui %0 : i1 to i32
    %c0_i32_0 = arith.constant 0 : i32
    %2 = arith.cmpi ne, %1, %c0_i32_0 : i32
    scf.if %2 {
      %cst_16 = arith.constant 0.000000e+00 : f32
      %20 = vector.broadcast %cst_16 : f32 to vector<16x32xf32>
      %c0_17 = arith.constant 0 : index
      %c0_18 = arith.constant 0 : index
      %21 = vector.load %arg9[%c0_17, %c0_18] : memref<16x32xf32, #tpu.memory_space<vmem>>, vector<16x32xf32>
      tpu.vector_store %arg9[%c0_17, %c0_18], %20 {strides = array<i32>} : memref<16x32xf32, #tpu.memory_space<vmem>>, vector<16x32xf32>,
    } else {
    }
    %c0 = arith.constant 0 : index
    %c0_1 = arith.constant 0 : index
    %3 = vector.load %arg2[%c0, %c0_1] : memref<16x32xbf16, #tpu.memory_space<vmem>>, vector<16x32xbf16>
    %c0_2 = arith.constant 0 : index
    %c0_3 = arith.constant 0 : index
    %4 = vector.load %arg3[%c0_2, %c0_3] : memref<32x64xbf16, #tpu.memory_space<vmem>>, vector<32x64xbf16>
    %cst = arith.constant dense<0.000000e+00> : vector<16x64xf32>
    %5 = tpu.matmul %3, %4, %cst {dimension_numbers = #tpu.dot_dimension_numbers<[1], [0], [0], [1], [0, 0, 1, 1], [], []>} : vector<16x32xbf16>, vector<32x64xbf16>, vector<16x64xf32> -> vector<16x64xf32>
    %c0_4 = arith.constant 0 : index
    %c0_5 = arith.constant 0 : index
    %6 = vector.load %arg4[%c0_4, %c0_5] : memref<1x64xf32, #tpu.memory_space<vmem>>, vector<1x64xf32>
    %7 = vector.broadcast %6 : vector<1x64xf32> to vector<16x64xf32>
    %8 = arith.addf %5, %7 : vector<16x64xf32>
    %cst_6 = arith.constant 0.000000e+00 : f32
    %9 = vector.broadcast %cst_6 : f32 to vector<16x64xf32>
    %10 = arith.maximumf %8, %9 : vector<16x64xf32>
    %11 = arith.truncf %10 : vector<16x64xf32> to vector<16x64xbf16>
    %c0_7 = arith.constant 0 : index
    %c0_8 = arith.constant 0 : index
    %12 = vector.load %arg9[%c0_7, %c0_8] : memref<16x32xf32, #tpu.memory_space<vmem>>, vector<16x32xf32>
    %c0_9 = arith.constant 0 : index
    %c0_10 = arith.constant 0 : index
    %13 = vector.load %arg5[%c0_9, %c0_10] : memref<64x32xbf16, #tpu.memory_space<vmem>>, vector<64x32xbf16>
    %cst_11 = arith.constant dense<0.000000e+00> : vector<16x32xf32>
    %14 = tpu.matmul %11, %13, %cst_11 {dimension_numbers = #tpu.dot_dimension_numbers<[1], [0], [0], [1], [0, 0, 1, 1], [], []>} : vector<16x64xbf16>, vector<64x32xbf16>, vector<16x32xf32> -> vector<16x32xf32>
    %15 = arith.addf %12, %14 : vector<16x32xf32>
    %c0_12 = arith.constant 0 : index
    %c0_13 = arith.constant 0 : index
    %16 = vector.load %arg9[%c0_12, %c0_13] : memref<16x32xf32, #tpu.memory_space<vmem>>, vector<16x32xf32>
    tpu.vector_store %arg9[%c0_12, %c0_13], %15 {strides = array<i32>} : memref<16x32xf32, #tpu.memory_space<vmem>>, vector<16x32xf32>,
    %c0_i32_14 = arith.constant 0 : i32
    %17 = arith.cmpi eq, %arg1, %c0_i32_14 : i32
    %18 = arith.extui %17 : i1 to i32
    %c0_i32_15 = arith.constant 0 : i32
    %19 = arith.cmpi ne, %18, %c0_i32_15 : i32
    scf.if %19 {
      %c0_16 = arith.constant 0 : index
      %c0_17 = arith.constant 0 : index
      %20 = vector.load %arg9[%c0_16, %c0_17] : memref<16x32xf32, #tpu.memory_space<vmem>>, vector<16x32xf32>
      %c0_18 = arith.constant 0 : index
      %c0_19 = arith.constant 0 : index
      %21 = vector.load %arg6[%c0_18, %c0_19] : memref<1x32xf32, #tpu.memory_space<vmem>>, vector<1x32xf32>
      %22 = vector.broadcast %21 : vector<1x32xf32> to vector<16x32xf32>
      %23 = arith.addf %20, %22 : vector<16x32xf32>
      %c0_20 = arith.constant 0 : index
      %c0_21 = arith.constant 0 : index
      %24 = vector.load %arg7[%c0_20, %c0_21] : memref<16x32xbf16, #tpu.memory_space<vmem>>, vector<16x32xbf16>
      %25 = arith.extf %24 : vector<16x32xbf16> to vector<16x32xf32>
      %26 = arith.addf %23, %25 : vector<16x32xf32>
      %27 = arith.truncf %26 : vector<16x32xf32> to vector<16x32xbf16>
      %c0_22 = arith.constant 0 : index
      %c0_23 = arith.constant 0 : index
      %28 = vector.load %arg8[%c0_22, %c0_23] : memref<16x32xbf16, #tpu.memory_space<vmem>>, vector<16x32xbf16>
      tpu.vector_store %arg8[%c0_22, %c0_23], %27 {strides = array<i32>} : memref<16x32xbf16, #tpu.memory_space<vmem>>, vector<16x32xbf16>,
    } else {
    }
    return
  }
  func.func @transform_0(%arg0: i32, %arg1: i32) -> (i32, i32) {
    %c0_i32 = arith.constant 0 : i32
    %c0_i32_0 = arith.constant 0 : i32
    return %arg0, %c0_i32 : i32, i32
  }
  func.func @transform_1(%arg0: i32, %arg1: i32) -> (i32, i32) {
    %c0_i32 = arith.constant 0 : i32
    %c0_i32_0 = arith.constant 0 : i32
    return %c0_i32, %arg1 : i32, i32
  }
  func.func @transform_2(%arg0: i32, %arg1: i32) -> (i32, i32) {
    %c0_i32 = arith.constant 0 : i32
    %c0_i32_0 = arith.constant 0 : i32
    return %c0_i32, %arg1 : i32, i32
  }
  func.func @transform_3(%arg0: i32, %arg1: i32) -> (i32, i32) {
    %c0_i32 = arith.constant 0 : i32
    %c0_i32_0 = arith.constant 0 : i32
    return %arg1, %c0_i32 : i32, i32
  }
  func.func @transform_4(%arg0: i32, %arg1: i32) -> (i32, i32) {
    %c0_i32 = arith.constant 0 : i32
    %c0_i32_0 = arith.constant 0 : i32
    %c0_i32_1 = arith.constant 0 : i32
    return %c0_i32, %c0_i32_0 : i32, i32
  }
  func.func @transform_5(%arg0: i32, %arg1: i32) -> (i32, i32) {
    %c0_i32 = arith.constant 0 : i32
    %c0_i32_0 = arith.constant 0 : i32
    return %arg0, %c0_i32 : i32, i32
  }
  func.func @transform_6(%arg0: i32, %arg1: i32) -> (i32, i32) {
    %c0_i32 = arith.constant 0 : i32
    %c0_i32_0 = arith.constant 0 : i32
    return %arg0, %c0_i32 : i32, i32
  }
}

module attributes {stable_mosaic.version = 11 : i64} {
  func.func @_linear_kernel(%arg0: i32, %arg1: i32, %arg2: i32, %arg3: memref<16x32xbf16, #tpu.memory_space<vmem>>, %arg4: memref<32x12xbf16, #tpu.memory_space<vmem>>, %arg5: memref<1x12xf32, #tpu.memory_space<vmem>>, %arg6: memref<16x12xf32, #tpu.memory_space<vmem>>, %arg7: memref<16x12xf32, #tpu.memory_space<vmem>>) attributes {dimension_semantics = [#tpu.dimension_semantics<parallel>, #tpu.dimension_semantics<parallel>, #tpu.dimension_semantics<arbitrary>], iteration_bounds = array<i64: 1, 1, 1>, scalar_prefetch = 0 : i64, scratch_operands = 1 : i64, tpu.core_type = #tpu.core_type<tc>, window_params = [{transform_indices = @transform_0, window_bounds = array<i64: 16, 32>}, {transform_indices = @transform_1, window_bounds = array<i64: 32, 12>}, {transform_indices = @transform_2, window_bounds = array<i64: 1, 12>}, {transform_indices = @transform_3, window_bounds = array<i64: 16, 12>}]} {
    %c0_i32 = arith.constant 0 : i32
    %0 = arith.cmpi eq, %arg2, %c0_i32 : i32
    %1 = arith.extui %0 : i1 to i32
    %c0_i32_0 = arith.constant 0 : i32
    %2 = arith.cmpi ne, %1, %c0_i32_0 : i32
    scf.if %2 {
      %cst_10 = arith.constant 0.000000e+00 : f32
      %12 = vector.broadcast %cst_10 : f32 to vector<16x12xf32>
      %c0_11 = arith.constant 0 : index
      %c0_12 = arith.constant 0 : index
      %13 = vector.load %arg7[%c0_11, %c0_12] : memref<16x12xf32, #tpu.memory_space<vmem>>, vector<16x12xf32>
      tpu.vector_store %arg7[%c0_11, %c0_12], %12 {strides = array<i32>} : memref<16x12xf32, #tpu.memory_space<vmem>>, vector<16x12xf32>,
    } else {
    }
    %c0 = arith.constant 0 : index
    %c0_1 = arith.constant 0 : index
    %3 = vector.load %arg7[%c0, %c0_1] : memref<16x12xf32, #tpu.memory_space<vmem>>, vector<16x12xf32>
    %c0_2 = arith.constant 0 : index
    %c0_3 = arith.constant 0 : index
    %4 = vector.load %arg3[%c0_2, %c0_3] : memref<16x32xbf16, #tpu.memory_space<vmem>>, vector<16x32xbf16>
    %c0_4 = arith.constant 0 : index
    %c0_5 = arith.constant 0 : index
    %5 = vector.load %arg4[%c0_4, %c0_5] : memref<32x12xbf16, #tpu.memory_space<vmem>>, vector<32x12xbf16>
    %cst = arith.constant dense<0.000000e+00> : vector<16x12xf32>
    %6 = tpu.matmul %4, %5, %cst {dimension_numbers = #tpu.dot_dimension_numbers<[1], [0], [0], [1], [0, 0, 1, 1], [], []>} : vector<16x32xbf16>, vector<32x12xbf16>, vector<16x12xf32> -> vector<16x12xf32>
    %7 = arith.addf %3, %6 : vector<16x12xf32>
    %c0_6 = arith.constant 0 : index
    %c0_7 = arith.constant 0 : index
    %8 = vector.load %arg7[%c0_6, %c0_7] : memref<16x12xf32, #tpu.memory_space<vmem>>, vector<16x12xf32>
    tpu.vector_store %arg7[%c0_6, %c0_7], %7 {strides = array<i32>} : memref<16x12xf32, #tpu.memory_space<vmem>>, vector<16x12xf32>,
    %c0_i32_8 = arith.constant 0 : i32
    %9 = arith.cmpi eq, %arg2, %c0_i32_8 : i32
    %10 = arith.extui %9 : i1 to i32
    %c0_i32_9 = arith.constant 0 : i32
    %11 = arith.cmpi ne, %10, %c0_i32_9 : i32
    scf.if %11 {
      %c0_10 = arith.constant 0 : index
      %c0_11 = arith.constant 0 : index
      %12 = vector.load %arg7[%c0_10, %c0_11] : memref<16x12xf32, #tpu.memory_space<vmem>>, vector<16x12xf32>
      %c0_12 = arith.constant 0 : index
      %c0_13 = arith.constant 0 : index
      %13 = vector.load %arg5[%c0_12, %c0_13] : memref<1x12xf32, #tpu.memory_space<vmem>>, vector<1x12xf32>
      %14 = vector.broadcast %13 : vector<1x12xf32> to vector<16x12xf32>
      %15 = arith.addf %12, %14 : vector<16x12xf32>
      %c0_14 = arith.constant 0 : index
      %c0_15 = arith.constant 0 : index
      %16 = vector.load %arg6[%c0_14, %c0_15] : memref<16x12xf32, #tpu.memory_space<vmem>>, vector<16x12xf32>
      tpu.vector_store %arg6[%c0_14, %c0_15], %15 {strides = array<i32>} : memref<16x12xf32, #tpu.memory_space<vmem>>, vector<16x12xf32>,
    } else {
    }
    return
  }
  func.func @transform_0(%arg0: i32, %arg1: i32, %arg2: i32) -> (i32, i32) {
    %c0_i32 = arith.constant 0 : i32
    return %arg0, %arg2 : i32, i32
  }
  func.func @transform_1(%arg0: i32, %arg1: i32, %arg2: i32) -> (i32, i32) {
    %c0_i32 = arith.constant 0 : i32
    return %arg2, %arg1 : i32, i32
  }
  func.func @transform_2(%arg0: i32, %arg1: i32, %arg2: i32) -> (i32, i32) {
    %c0_i32 = arith.constant 0 : i32
    %c0_i32_0 = arith.constant 0 : i32
    return %c0_i32, %arg1 : i32, i32
  }
  func.func @transform_3(%arg0: i32, %arg1: i32, %arg2: i32) -> (i32, i32) {
    %c0_i32 = arith.constant 0 : i32
    return %arg0, %arg1 : i32, i32
  }
}

</mosaic_0001>

<bundles_post_ra>
// kernel: _lambda_.49
= control target key start
LH: loop header
LB: loop body
LE: loop exit
PB: predicated region body
PF: predicated region fallthrough
CT: control target
= control target key end

     0   :  { %vm22_vm0 = vcmask 261120   ;;  %v163_v0 = vmov 0.0   ;;  %vm164_vm1 = vmmov 0   ;;  %vm127_vm2 = vcmask 257024   ;;  %s216_s1 = inlined_call_operand.vmem [shape: bf16[32,32], index: 1, kind: input, shape index: {}]   ;;  %s217_s0 = inlined_call_operand.vmem [shape: bf16[16,32], index: 0, kind: input, shape index: {}]   ;;  %s218_s3 = inlined_call_operand.vmem [shape: bf16[16,32], index: 3, kind: input, shape index: {}]   ;;  %s219_s2 = inlined_call_operand.vmem [shape: f32[1,32], index: 2, kind: input, shape index: {}]   ;;  %s220_s4 = inlined_call_operand.vmem [shape: bf16[16,32], index: 4, kind: output, shape index: {}]  }
   0x1   :  { %150 = vmatprep.subr.bf16.mxu0 %v163_v0  ;;  %v160_v1 = vld [vmem:[%s216_s1 + $0x8] sm:$0xff]   ;;  %154 = vmatprep.mubr.msk.bf16.mxu0 %vm164_vm1, %v163_v0  ;;  %23 = vst.msk [vmem:[#allocation2] sm:$0xff] %vm22_vm0, %v163_v0  ;;  %24 = vst.msk [vmem:[#allocation2 + $0x8] sm:$0xff] %vm22_vm0, %v163_v0  ;;  %v161_v2 = vld [vmem:[%s216_s1] sm:$0xff]  }
   0x2   :  { %151 = vmatpush3.bf16.msra.mxu0 %v160_v1  ;;  %v162_v3 = vld [vmem:[%s217_s0] sm:$0xff]  }
   0x3   :  { %152 = vmatprep.subr.bf16.mxu0 %v163_v0  ;;  %v144_v11 = vld [vmem:[%s218_s3] sm:$0xff]  }
   0x4   :  { %v138_v13 = vld [vmem:[%s219_s2] ss:$0 sm:$0xff]  ;;  %v145_v14 = vunpack.c.l.bf16 %v144_v11  ;;  %v146_v18 = vunpack.c.h.bf16 %v144_v11 }
   0x6   :  { %153 = vmatpush3.bf16.msra.mxu0 %v161_v2 }
   0x8   :  { %v25_v4 = vld [vmem:[#allocation2] sm:$0xff]  ;;  %v26_v8 = vld [vmem:[#allocation2 + $0x8] sm:$0xff] }
   0x9   :  { %155 = vmatmul.mubr.msk.bf16.vlgmr.msra.gmra.mxu0 %vm22_vm0, %v162_v3 }
  0xc9   :  { %v88_v5 = vpop.f32.mrf.mxu0 }
  0xca   :  { %v95_v6 = vadd.f32 %v88_v5, %v25_v4 }
  0xcb   :  { %v156_v7 = vpop.f32.mrf.mxu0 }
  0xcc   :  { %97 = vst.msk [vmem:[#allocation2] sm:$0xff] %vm22_vm0, %v95_v6 }
  0xcd   :  { %v91_v9 = vpop.f32.mrf.mxu0 }
  0xce   :  { %v96_v10 = vadd.f32 %v91_v9, %v26_v8 }
  0xcf   :  { %v157_v12 = vpop.f32.mrf.mxu0 }
  0xd0   :  { %98 = vst.msk [vmem:[#allocation2 + $0x8] sm:$0xff] %vm22_vm0, %v96_v10 }
  0xd3   :  { %v102_v15 = vld [vmem:[#allocation2] sm:$0xff] }
  0xd4   :  { %v111_v16 = vadd.f32 %v138_v13, %v102_v15 }
  0xd6   :  { %v117_v17 = vadd.f32 %v145_v14, %v111_v16 }
  0xd7   :  { %v103_v19 = vld [vmem:[#allocation2 + $0x8] sm:$0xff] }
  0xd8   :  { %v141_v20 = vpack.c.bf16 %v117_v17, %v117_v17  ;;  %v112_v21 = vadd.f32 %v138_v13, %v103_v19 }
  0xda   :  { %128 = vst.msk [vmem:[%s220_s4] sm:$0xf] %vm127_vm2, %v141_v20  ;;  %v118_v22 = vadd.f32 %v146_v18, %v112_v21 }
  0xdc   :  { %v142_v23 = vpack.c.bf16 %v118_v22, %v118_v22 }
  0xde   :  { %129 = vst.msk [vmem:[%s220_s4 + $0x4] sm:$0xf] %vm127_vm2, %v142_v23 }

// kernel: _lambda_.50
= control target key start
LH: loop header
LB: loop body
LE: loop exit
PB: predicated region body
PF: predicated region fallthrough
CT: control target
= control target key end

     0   :  { %vm18_vm0 = vcmask 261120   ;;  %vm72_vm1 = vcmask 257024   ;;  %s132_s0 = inlined_call_operand.vmem [shape: bf16[16,32], index: 0, kind: input, shape index: {}]   ;;  %s133_s1 = inlined_call_operand.vmem [shape: f32[1,32], index: 1, kind: input, shape index: {}]   ;;  %s134_s2 = inlined_call_operand.vmem [shape: f32[1,32], index: 2, kind: input, shape index: {}]   ;;  %s135_s3 = inlined_call_operand.vmem [shape: bf16[16,32], index: 3, kind: output, shape index: {}]  }
   0x1   :  { %v86_v0 = vld [vmem:[%s132_s0] sm:$0xff]  }
   0x2   :  { %v87_v1 = vunpack.c.l.bf16 %v86_v0  ;;  %v88_v2 = vunpack.c.h.bf16 %v86_v0  ;;  %v79_v22 = vld [vmem:[%s133_s1] ss:$0 sm:$0xff] }
   0x3   :  { %v80_v24 = vld [vmem:[%s134_s2] ss:$0 sm:$0xff] }
   0x4   :  { %v19_v3 = vsel %vm18_vm0, %v87_v1, 0.0  ;;  %v22_v4 = vsel %vm18_vm0, %v88_v2, 0.0 }
   0x5   :  { %20 = vadd.xlane.f32.xlu0 %v19_v3 }
   0x9   :  { %23 = vadd.xlane.f32.xlu0 %v22_v4 }
  0x8e   :  { %v21_v5 = vpop.xlane.xlu0 %20 }
  0x8f   :  { %v26_v6 = vmul.f32 0.03125, %v21_v5 }
  0x91   :  { %v28_v7 = vsub.f32 %v87_v1, %v26_v6 }
  0x92   :  { %v24_v8 = vpop.xlane.xlu0 %23 }
  0x93   :  { %v27_v9 = vmul.f32 0.03125, %v24_v8  ;;  %v30_v10 = vmul.f32 %v28_v7, %v28_v7 }
  0x95   :  { %v29_v11 = vsub.f32 %v88_v2, %v27_v9  ;;  %v32_v12 = vsel %vm18_vm0, %v30_v10, 0.0 }
  0x96   :  { %33 = vadd.xlane.f32.xlu1 %v32_v12 }
  0x97   :  { %v31_v13 = vmul.f32 %v29_v11, %v29_v11 }
  0x99   :  { %v35_v14 = vsel %vm18_vm0, %v31_v13, 0.0 }
  0x9a   :  { %36 = vadd.xlane.f32.xlu1 %v35_v14 }
 0x11f   :  { %v34_v15 = vpop.xlane.xlu1 %33 }
 0x120   :  { %v38_v16 = vmul.f32 0.03125, %v34_v15 }
 0x122   :  { %v40_v17 = vadd.f32 1e-05, %v38_v16 }
 0x123   :  { %v37_v18 = vpop.xlane.xlu1 %36 }
 0x124   :  { %89 = vrsqrt.f32 %v40_v17  ;;  %v39_v19 = vmul.f32 0.03125, %v37_v18 }
 0x126   :  { %v41_v20 = vadd.f32 1e-05, %v39_v19 }
 0x128   :  { %91 = vrsqrt.f32 %v41_v20 }
 0x131   :  { %v90_v21 = vpop.eup %89 }
 0x132   :  { %v44_v23 = vmul.f32 %v90_v21, %v28_v7 }
 0x134   :  { %v53_v25 = vmul.f32 %v79_v22, %v44_v23 }
 0x135   :  { %v92_v26 = vpop.eup %91 }
 0x136   :  { %v62_v27 = vadd.f32 %v80_v24, %v53_v25  ;;  %v45_v28 = vmul.f32 %v92_v26, %v29_v11 }
 0x138   :  { %v83_v29 = vpack.c.bf16 %v62_v27, %v62_v27  ;;  %v54_v30 = vmul.f32 %v79_v22, %v45_v28 }
 0x13a   :  { %73 = vst.msk [vmem:[%s135_s3] sm:$0xf] %vm72_vm1, %v83_v29  ;;  %v63_v31 = vadd.f32 %v80_v24, %v54_v30 }
 0x13c   :  { %v84_v32 = vpack.c.bf16 %v63_v31, %v63_v31 }
 0x13e   :  { %74 = vst.msk [vmem:[%s135_s3 + $0x4] sm:$0xf] %vm72_vm1, %v84_v32 }

// kernel: _lambda_.45
= control target key start
LH: loop header
LB: loop body
LE: loop exit
PB: predicated region body
PF: predicated region fallthrough
CT: control target
= control target key end

     0   :  { %vm19_vm0 = vcmask 261120   ;;  %v150_v0 = vmov 0.0   ;;  %vm151_vm1 = vmmov 0   ;;  %vm118_vm2 = vcmask 257024   ;;  %s195_s1 = inlined_call_operand.vmem [shape: bf16[32,32], index: 1, kind: input, shape index: {}]   ;;  %s196_s0 = inlined_call_operand.vmem [shape: bf16[16,32], index: 0, kind: input, shape index: {}]   ;;  %s197_s2 = inlined_call_operand.vmem [shape: f32[1,32], index: 2, kind: input, shape index: {}]   ;;  %s198_s3 = inlined_call_operand.vmem [shape: bf16[16,32], index: 3, kind: output, shape index: {}]  }
   0x1   :  { %137 = vmatprep.subr.bf16.mxu0 %v150_v0  ;;  %v147_v1 = vld [vmem:[%s195_s1 + $0x8] sm:$0xff]   ;;  %141 = vmatprep.mubr.msk.bf16.mxu0 %vm151_vm1, %v150_v0  ;;  %20 = vst.msk [vmem:[#allocation2] sm:$0xff] %vm19_vm0, %v150_v0  ;;  %21 = vst.msk [vmem:[#allocation2 + $0x8] sm:$0xff] %vm19_vm0, %v150_v0  ;;  %v148_v2 = vld [vmem:[%s195_s1] sm:$0xff]  }
   0x2   :  { %138 = vmatpush3.bf16.msra.mxu0 %v147_v1  ;;  %v149_v3 = vld [vmem:[%s196_s0] sm:$0xff]  }
   0x3   :  { %139 = vmatprep.subr.bf16.mxu0 %v150_v0  ;;  %v129_v12 = vld [vmem:[%s197_s2] ss:$0 sm:$0xff] }
   0x6   :  { %140 = vmatpush3.bf16.msra.mxu0 %v148_v2 }
   0x8   :  { %v22_v4 = vld [vmem:[#allocation2] sm:$0xff]  ;;  %v23_v8 = vld [vmem:[#allocation2 + $0x8] sm:$0xff] }
   0x9   :  { %142 = vmatmul.mubr.msk.bf16.vlgmr.msra.gmra.mxu0 %vm19_vm0, %v149_v3 }
  0xc9   :  { %v85_v5 = vpop.f32.mrf.mxu0 }
  0xca   :  { %v92_v6 = vadd.f32 %v85_v5, %v22_v4 }
  0xcb   :  { %v143_v7 = vpop.f32.mrf.mxu0 }
  0xcc   :  { %94 = vst.msk [vmem:[#allocation2] sm:$0xff] %vm19_vm0, %v92_v6 }
  0xcd   :  { %v88_v9 = vpop.f32.mrf.mxu0 }
  0xce   :  { %v93_v10 = vadd.f32 %v88_v9, %v23_v8 }
  0xcf   :  { %v144_v11 = vpop.f32.mrf.mxu0 }
  0xd0   :  { %95 = vst.msk [vmem:[#allocation2 + $0x8] sm:$0xff] %vm19_vm0, %v93_v10 }
  0xd3   :  { %v99_v13 = vld [vmem:[#allocation2] sm:$0xff] }
  0xd4   :  { %v108_v14 = vadd.f32 %v129_v12, %v99_v13 }
  0xd6   :  { %v132_v15 = vpack.c.bf16 %v108_v14, %v108_v14 }
  0xd7   :  { %v100_v16 = vld [vmem:[#allocation2 + $0x8] sm:$0xff] }
  0xd8   :  { %119 = vst.msk [vmem:[%s198_s3] sm:$0xf] %vm118_vm2, %v132_v15  ;;  %v109_v17 = vadd.f32 %v129_v12, %v100_v16 }
  0xda   :  { %v133_v18 = vpack.c.bf16 %v109_v17, %v109_v17 }
  0xdc   :  { %120 = vst.msk [vmem:[%s198_s3 + $0x4] sm:$0xf] %vm118_vm2, %v133_v18 }

// kernel: _lambda_.48
= control target key start
LH: loop header
LB: loop body
LE: loop exit
PB: predicated region body
PF: predicated region fallthrough
CT: control target
= control target key end

     0   :  { %s1213_s12 = smov 0   ;;  %s1215_s13 = smov 0   ;;  %s1387_s0 = inlined_call_operand.vmem [shape: bf16[2,8,32], index: 0, kind: input, shape index: {}]   ;;  %s1388_s1 = inlined_call_operand.vmem [shape: bf16[2,8,32], index: 1, kind: input, shape index: {}]   ;;  %s1389_s2 = inlined_call_operand.vmem [shape: bf16[2,8,32], index: 2, kind: input, shape index: {}]   ;;  %s1390_s3 = inlined_call_operand.vmem [shape: bf16[2,8,32], index: 3, kind: output, shape index: {}]  }
   0x1   :  { %s1217_s14 = smov 0  }
   0x2 LB: > { %s32_s15 = sadd.s32 1, %s1177_s13  ;;  %p1009_p0 = scmp.ge.s32.totalorder %s1181_s14, 1  ;;  %s1181_s14 = sphi %s1217_s14, %s13_s14   ;;  %s1177_s13 = sphi %s1215_s13, %s1392_s13   ;;  %s1173_s12 = sphi %s1213_s12, %s1391_s12  }
   0x3   : > { %p34_p1 = scmp.ge.s32.totalorder %s32_s15, 2  ;;  %p190_p2 = scmp.lt.s32.totalorder %s1181_s14, 3 }
   0x5   : > { %s1394_s15 = smov (%p34_p1, %s32_s15), 0  ;;  %p191_p3 = pnand %p1009_p0, %p190_p2 }
   0x6   : > { %p232_p4 = scmp.lt.s32.totalorder (!%p191_p3), %s1173_s12, 1  ;;  %s1187_s23 = smov (!%p191_p3), 120  }
   0x7   : > { %194 = sbr.rel (%p191_p3) target bundleno = 1413 (0x585), region = 32  ;;  %s1188_s24 = smov (!%p191_p3), 112  }
   0x8   : > { %s1189_s25 = smov (!%p191_p3), 104   ;;  %s1190_s5 = smov (!%p191_p3), 8  }
   0x9   : > { %s1191_s6 = smov (!%p191_p3), 16   ;;  %s1192_s7 = smov (!%p191_p3), 24  }
   0xc   : > { %vm274_vm0 = vcmask 64512   ;;  %v1183_v0 = vmov 0.0   ;;  %vm1184_vm1 = vmmov 0   ;;  %s1396_s12 = smov (!%p232_p4, %s1173_s12), 1  ;;  %vm265_vm2 = vcmask 7168  }
   0xd   : > { %1049 = vmatprep.subr.bf16.mxu0 %v1183_v0  ;;  %275 = vst.msk [vmem:[#allocation4] sm:$0xff] %vm274_vm0, %v1183_v0  ;;  %276 = vst.msk [vmem:[#allocation4 + $0x8] sm:$0xff] %vm274_vm0, %v1183_v0  ;;  %1051 = vmatprep.mubr.msk.bf16.mxu0 %vm1184_vm1, %v1183_v0  ;;  %s1245_s16 = sshll.u32 %s1396_s12, 2  ;;  %v1185_v4 = vmov -1e+30   ;;  %v1186_v11 = vmov 0  }
   0xe   : > { %277 = vst.msk [vmem:[#allocation4 + $0x10] sm:$0xff] %vm274_vm0, %v1183_v0  ;;  %278 = vst.msk [vmem:[#allocation4 + $0x18] sm:$0xff] %vm274_vm0, %v1183_v0  ;;  %1055 = vmatprep.subr.bf16.mxu1 %v1183_v0  ;;  %1057 = vmatprep.mubr.msk.bf16.mxu1 %vm1184_vm1, %v1183_v0  ;;  %s245_s19 = scalar_lea.vmem %s1388_s1, %s1245_s16  ;;  %s238_s22 = scalar_lea.vmem %s1387_s0, %s1245_s16  ;;  %vm365_vm3 = vcmask 1043456   ;;  %vm842_vm4 = vcmask 60416   ;;  %vm860_vm5 = vcmask 126016   ;;  %vm878_vm6 = vcmask 191616  }
   0xf   : > { %v280_v1 = vld [vmem:[%s245_s19] sm:$0xf]  ;;  %266 = vst.msk [vmem:[#allocation2] sm:$0xff] %vm265_vm2, %v1185_v4  ;;  %267 = vst.msk [vmem:[#allocation2 + $0x8] sm:$0xff] %vm265_vm2, %v1185_v4  ;;  %1131 = vset.pattern.permute.xlu0 %v1186_v11  ;;  %1132 = vset.pattern.permute.xlu1 %v1186_v11  ;;  %s252_s28 = scalar_lea.vmem %s1389_s2, %s1245_s16  ;;  %s1371_s4 = scalar_lea.vmem %s1390_s3, %s1245_s16  ;;  %vm896_vm7 = vcmask 257216  }
  0x10   : > { %v287_v2 = vsel %vm274_vm0, %v280_v1, 0  ;;  %v279_v3 = vld [vmem:[%s238_s22] sm:$0xf]  ;;  %268 = vst.msk [vmem:[#allocation2 + $0x10] sm:$0xff] %vm265_vm2, %v1185_v4  ;;  %269 = vst.msk [vmem:[#allocation2 + $0x18] sm:$0xff] %vm265_vm2, %v1185_v4  ;;  %v1017_v12 = vcombine.low %v280_v1, %v280_v1 }
  0x11   : > { %1050 = vmatpush3.bf16.xpose.msra.mxu0 %v287_v2  ;;  %270 = vst.msk [vmem:[#allocation3] sm:$0xff] %vm265_vm2, %v1183_v0  ;;  %271 = vst.msk [vmem:[#allocation3 + $0x8] sm:$0xff] %vm265_vm2, %v1183_v0  ;;  %v1016_v13 = vcombine.low %v279_v3, %v279_v3  ;;  %v1293_v18 = vld [vmem:[%s252_s28] sm:$0xf] }
  0x12   : > { %1067 = vmatprep.subr.bf16.mxu0 %v1183_v0  ;;  %272 = vst.msk [vmem:[#allocation3 + $0x10] sm:$0xff] %vm265_vm2, %v1183_v0  ;;  %273 = vst.msk [vmem:[#allocation3 + $0x18] sm:$0xff] %vm265_vm2, %v1183_v0  ;;  %420 = vrot.lane.b32.xlu1 %v1017_v12, %s1187_s23  ;;  %v367_v19 = vsel %vm365_vm3, %v1293_v18, 0  ;;  %v1019_v4 = vcombine.low %v1293_v18, %v1293_v18 }
  0x13   : > { %1056 = vmatpush3.bf16.msra.mxu1 %v367_v19 }
  0x14   : > { %1061 = vmatprep.subr.bf16.mxu1 %v1183_v0 }
  0x16   : > { %415 = vrot.lane.b32.xlu1 %v1016_v13, %s1187_s23  ;;  %v1279_v14 = vld [vmem:[#allocation2] sm:$0xff]  ;;  %v470_v56 = vld [vmem:[#allocation2 + $0x8] sm:$0xff] }
  0x17   : > { %v1323_v60 = vld [vmem:[#allocation2 + $0x10] sm:$0xff]  ;;  %v745_v1 = vld [vmem:[#allocation2 + $0x18] sm:$0xff] }
  0x18   : > { %1052 = vmatmul.mubr.msk.bf16.vlgmr.msra.gmra.mxu0 %vm274_vm0, %v279_v3 }
  0x19   : > { %1069 = vmatprep.mubr.msk.bf16.mxu0 %vm1184_vm1, %v1183_v0 }
  0x1a   : > { %559 = vrot.lane.b32.xlu1 %v1017_v12, %s1188_s24 }
  0x1e   : > { %557 = vrot.lane.b32.xlu1 %v1016_v13, %s1188_s24 }
  0x22   : > { %695 = vrot.lane.b32.xlu1 %v1017_v12, %s1189_s25 }
  0x26   : > { %693 = vrot.lane.b32.xlu1 %v1016_v13, %s1189_s25 }
  0x84   : > { %v421_v23 = vpop.permute.xlu1 %420 }
  0x85   : > { %v426_v26 = vsel %vm274_vm0, %v421_v23, 0 }
  0x88   : > { %v416_v24 = vpop.permute.xlu1 %415 }
  0x8c   : > { %v560_v28 = vpop.permute.xlu1 %559 }
  0x8d   : > { %v565_v30 = vsel %vm274_vm0, %v560_v28, 0 }
  0x90   : > { %v558_v29 = vpop.permute.xlu1 %557 }
  0x94   : > { %v696_v31 = vpop.permute.xlu1 %695 }
  0x95   : > { %v701_v32 = vsel %vm274_vm0, %v696_v31, 0 }
  0x98   : > { %v694_v33 = vpop.permute.xlu1 %693 }
  0xd8   : > { %v323_v5 = vpop.f32.mrf.mxu0 }
  0xd9   : > { %v329_v6 = vmul.f32 0.35355338, %v323_v5 }
  0xda   : > { %v1053_v7 = vpop.f32.mrf.mxu0 }
  0xdb   : > { %v331_v8 = vsel %vm274_vm0, %v329_v6, -inf }
  0xdc   : > { %332 = vmax.xlane.f32.xlu0 %v331_v8  ;;  %v326_v9 = vpop.f32.mrf.mxu0 }
  0xde   : > { %v1054_v10 = vpop.f32.mrf.mxu0 }
 0x165   : > { %v333_v15 = vpop.xlane.xlu0 %332 }
 0x166   : > { %v1282_v16 = vmax.f32 %v1279_v14, %v333_v15 }
 0x168   : > { %v335_v17 = vsub.f32 %v1279_v14, %v1282_v16  ;;  %411 = vst.msk [vmem:[#allocation2] sm:$0xff] %vm265_vm2, %v1282_v16  ;;  %340 = vperm.xlu0 %1131, %v1282_v16  }
 0x1e3   : > { %v341_v20 = vpop.permute.xlu0 %340 }
 0x1e4   : > { %v343_v21 = vsub.f32 %v329_v6, %v341_v20 }
 0x1e6   : > { %v344_v22 = vmul.f32 1.442695, %v343_v21 }
 0x1e8   : > { %1135 = vpow2.f32 %v344_v22 }
 0x1f5   : > { %v1298_v25 = vpop.eup %1135 }
 0x1f6   : > { %v361_v27 = vpack.c.bf16 %v1298_v25, %v1298_v25  ;;  %v348_v6 = vsel %vm274_vm0, %v1298_v25, 0.0 }
 0x1f8   : > { %1058 = vmatmul.mubr.msk.bf16.vlgmr.msra.gmra.mxu1 %vm274_vm0, %v361_v27 }
 0x1f9   : > { %1062 = vmatpush3.bf16.xpose.msra.mxu1 %v426_v26  ;;  %1063 = vmatprep.mubr.msk.bf16.mxu1 %vm1184_vm1, %v1183_v0 }
 0x1fa   : > { %1073 = vmatprep.subr.bf16.mxu1 %v1183_v0 }
 0x200   : > { %1064 = vmatmul.mubr.msk.bf16.vlgmr.msra.gmra.mxu1 %vm274_vm0, %v416_v24 }
 0x201   : > { %1074 = vmatpush3.bf16.xpose.msra.mxu1 %v565_v30  ;;  %1075 = vmatprep.mubr.msk.bf16.mxu1 %vm1184_vm1, %v1183_v0 }
 0x202   : > { %1085 = vmatprep.subr.bf16.mxu1 %v1183_v0 }
 0x208   : > { %1076 = vmatmul.mubr.msk.bf16.vlgmr.msra.gmra.mxu1 %vm274_vm0, %v558_v29 }
 0x209   : > { %1086 = vmatpush3.bf16.xpose.msra.mxu1 %v701_v32  ;;  %1087 = vmatprep.mubr.msk.bf16.mxu1 %vm1184_vm1, %v1183_v0 }
 0x210   : > { %1088 = vmatmul.mubr.msk.bf16.vlgmr.msra.gmra.mxu1 %vm274_vm0, %v694_v33 }
 0x2b8   : > { %v1317_v34 = vpop.f32.mrf.mxu1 }
 0x2ba   : > { %v1059_v35 = vpop.f32.mrf.mxu1 }
 0x2bc   : > { %v406_v36 = vpop.f32.mrf.mxu1 }
 0x2be   : > { %v1060_v37 = vpop.f32.mrf.mxu1 }
 0x2bf   : > { %v336_v37 = vmul.f32 1.442695, %v335_v17  ;;  %v487_v17 = vld [vmem:[#allocation3 + $0x8] sm:$0xff] }
 0x2c0   : > { %v462_v38 = vpop.f32.mrf.mxu1 }
 0x2c1   : > { %v468_v39 = vmul.f32 0.35355338, %v462_v38 }
 0x2c2   : > { %v1065_v40 = vpop.f32.mrf.mxu1 }
 0x2c3   : > { %v471_v41 = vsel %vm274_vm0, %v468_v39, -inf }
 0x2c4   : > { %472 = vmax.xlane.f32.xlu1 %v471_v41  ;;  %v465_v42 = vpop.f32.mrf.mxu1 }
 0x2c5   : > { %v346_v42 = vld [vmem:[#allocation3] sm:$0xff] }
 0x2c6   : > { %v1066_v43 = vpop.f32.mrf.mxu1 }
 0x2c8   : > { %v601_v44 = vpop.f32.mrf.mxu1 }
 0x2c9   : > { %v607_v45 = vmul.f32 0.35355338, %v601_v44 }
 0x2ca   : > { %v1077_v46 = vpop.f32.mrf.mxu1 }
 0x2cb   : > { %v610_v47 = vsel %vm274_vm0, %v607_v45, -inf }
 0x2cc   : > { %611 = vmax.xlane.f32.xlu0 %v610_v47  ;;  %v604_v48 = vpop.f32.mrf.mxu1 }
 0x2ce   : > { %v1078_v49 = vpop.f32.mrf.mxu1 }
 0x2cf   : > { %v626_v49 = vld [vmem:[#allocation3 + $0x10] sm:$0xff] }
 0x2d0   : > { %v737_v50 = vpop.f32.mrf.mxu1 }
 0x2d1   : > { %v743_v51 = vmul.f32 0.35355338, %v737_v50 }
 0x2d2   : > { %v1089_v52 = vpop.f32.mrf.mxu1 }
 0x2d3   : > { %v746_v53 = vsel %vm274_vm0, %v743_v51, -inf }
 0x2d4   : > { %747 = vmax.xlane.f32.xlu1 %v746_v53  ;;  %v740_v54 = vpop.f32.mrf.mxu1 }
 0x2d5   : > { %v762_v54 = vld [vmem:[#allocation3 + $0x18] sm:$0xff] }
 0x2d6   : > { %v1090_v55 = vpop.f32.mrf.mxu1 }
 0x34d   : > { %v473_v57 = vpop.xlane.xlu1 %472 }
 0x34e   : > { %v474_v58 = vmax.f32 %v470_v56, %v473_v57 }
 0x350   : > { %v475_v59 = vsub.f32 %v470_v56, %v474_v58  ;;  %556 = vst.msk [vmem:[#allocation2 + $0x8] sm:$0xff] %vm265_vm2, %v474_v58  ;;  %480 = vperm.xlu1 %1132, %v474_v58  }
 0x352   : > { %v476_v27 = vmul.f32 1.442695, %v475_v59  ;;  %v354_v59 = vld [vmem:[#allocation4] sm:$0xff] }
 0x355   : > { %v612_v61 = vpop.xlane.xlu0 %611 }
 0x356   : > { %v1326_v62 = vmax.f32 %v1323_v60, %v612_v61 }
 0x358   : > { %v614_v63 = vsub.f32 %v1323_v60, %v1326_v62  ;;  %692 = vst.msk [vmem:[#allocation2 + $0x10] sm:$0xff] %vm265_vm2, %v1326_v62  ;;  %619 = vperm.xlu0 %1131, %v1326_v62  }
 0x35d   : > { %v748_v2 = vpop.xlane.xlu1 %747 }
 0x35e   : > { %v749_v3 = vmax.f32 %v745_v1, %v748_v2 }
 0x360   : > { %v750_v5 = vsub.f32 %v745_v1, %v749_v3  ;;  %828 = vst.msk [vmem:[#allocation2 + $0x18] sm:$0xff] %vm265_vm2, %v749_v3  ;;  %755 = vperm.xlu1 %1132, %v749_v3  }
 0x362   : > { %v751_v30 = vmul.f32 1.442695, %v750_v5 }
 0x364   : > { %506 = vrot.lane.b32.xlu1 %v1019_v4, %s1187_s23 }
 0x368   : > { %642 = vrot.lane.b32.xlu1 %v1019_v4, %s1188_s24 }
 0x36c   : > { %778 = vrot.lane.b32.xlu1 %v1019_v4, %s1189_s25  ;;  %v495_v4 = vld [vmem:[#allocation4 + $0x8] sm:$0xff] }
 0x390   : > { %349 = vadd.xlane.f32.xlu1 %v348_v6 }
 0x3cb   : > { %v481_v7 = vpop.permute.xlu1 %480 }
 0x3cc   : > { %v483_v8 = vsub.f32 %v468_v39, %v481_v7  ;;  %v615_v39 = vmul.f32 1.442695, %v614_v63 }
 0x3ce   : > { %v484_v9 = vmul.f32 1.442695, %v483_v8 }
 0x3d0   : > { %1137 = vpow2.f32 %v484_v9 }
 0x3d3   : > { %v620_v10 = vpop.permute.xlu0 %619 }
 0x3d4   : > { %v622_v11 = vsub.f32 %v607_v45, %v620_v10  ;;  %v634_v10 = vld [vmem:[#allocation4 + $0x10] sm:$0xff] }
 0x3d6   : > { %v623_v12 = vmul.f32 1.442695, %v622_v11 }
 0x3d8   : > { %1139 = vpow2.f32 %v623_v12 }
 0x3db   : > { %v756_v13 = vpop.permute.xlu1 %755 }
 0x3dc   : > { %v758_v15 = vsub.f32 %v743_v51, %v756_v13 }
 0x3dd   : > { %v1138_v18 = vpop.eup %1137 }
 0x3de   : > { %v759_v19 = vmul.f32 1.442695, %v758_v15  ;;  %v489_v20 = vsel %vm274_vm0, %v1138_v18, 0.0  ;;  %v502_v23 = vpack.c.bf16 %v1138_v18, %v1138_v18 }
 0x3df   : > { %490 = vadd.xlane.f32.xlu0 %v489_v20  ;;  %v507_v21 = vpop.permute.xlu1 %506 }
 0x3e0   : > { %1141 = vpow2.f32 %v759_v19  ;;  %v512_v22 = vsel %vm365_vm3, %v507_v21, 0 }
 0x3e1   : > { %1068 = vmatpush3.bf16.msra.mxu0 %v512_v22  ;;  %1143 = vpow2.f32 %v476_v27 }
 0x3e2   : > { %1079 = vmatprep.subr.bf16.mxu0 %v1183_v0  ;;  %1145 = vpow2.f32 %v751_v30 }
 0x3e3   : > { %v643_v24 = vpop.permute.xlu1 %642  ;;  %1147 = vpow2.f32 %v336_v37 }
 0x3e4   : > { %1070 = vmatmul.mubr.msk.bf16.vlgmr.msra.gmra.mxu0 %vm274_vm0, %v502_v23  ;;  %v648_v25 = vsel %vm365_vm3, %v643_v24, 0  ;;  %1149 = vpow2.f32 %v615_v39  ;;  %v770_v24 = vld [vmem:[#allocation4 + $0x18] sm:$0xff] }
 0x3e5   : > { %v1140_v26 = vpop.eup %1139  ;;  %1080 = vmatpush3.bf16.msra.mxu0 %v648_v25  ;;  %1081 = vmatprep.mubr.msk.bf16.mxu0 %vm1184_vm1, %v1183_v0 }
 0x3e6   : > { %v628_v28 = vsel %vm274_vm0, %v1140_v26, 0.0  ;;  %1091 = vmatprep.subr.bf16.mxu0 %v1183_v0  ;;  %v641_v31 = vpack.c.bf16 %v1140_v26, %v1140_v26 }
 0x3e7   : > { %629 = vadd.xlane.f32.xlu1 %v628_v28  ;;  %v779_v29 = vpop.permute.xlu1 %778 }
 0x3e8   : > { %v784_v32 = vsel %vm365_vm3, %v779_v29, 0 }
 0x3ec   : > { %1082 = vmatmul.mubr.msk.bf16.vlgmr.msra.gmra.mxu0 %vm274_vm0, %v641_v31 }
 0x3ed   : > { %v1142_v33 = vpop.eup %1141  ;;  %1092 = vmatpush3.bf16.msra.mxu0 %v784_v32  ;;  %1093 = vmatprep.mubr.msk.bf16.mxu0 %vm1184_vm1, %v1183_v0 }
 0x3ee   : > { %v764_v35 = vsel %vm274_vm0, %v1142_v33, 0.0  ;;  %v777_v36 = vpack.c.bf16 %v1142_v33, %v1142_v33  ;;  %v1144_v38 = vpop.eup %1143 }
 0x3ef   : > { %765 = vadd.xlane.f32.xlu0 %v764_v35  ;;  %v1146_v40 = vpop.eup %1145  ;;  %v488_v46 = vmul.f32 %v1144_v38, %v487_v17 }
 0x3f0   : > { %v1148_v41 = vpop.eup %1147  ;;  %v763_v55 = vmul.f32 %v1146_v40, %v762_v54 }
 0x3f1   : > { %v1150_v0 = vpop.eup %1149  ;;  %v347_v43 = vmul.f32 %v1148_v41, %v346_v42 }
 0x3f2   : > { %v627_v50 = vmul.f32 %v1150_v0, %v626_v49 }
 0x3f4   : > { %1094 = vmatmul.mubr.msk.bf16.vlgmr.msra.gmra.mxu0 %vm274_vm0, %v777_v36 }
 0x3f8   : > { %498 = vperm.xlu1 %1132, %v1144_v38  }
 0x3fc   : > { %773 = vperm.xlu1 %1132, %v1146_v40  }
 0x405   : > { %357 = vperm.xlu0 %1131, %v1148_v41  }
 0x409   : > { %637 = vperm.xlu0 %1131, %v1150_v0  }
 0x419   : > { %v350_v44 = vpop.xlane.xlu1 %349 }
 0x41a   : > { %v351_v45 = vadd.f32 %v350_v44, %v347_v43 }
 0x41c   : > { %353 = vst.msk [vmem:[#allocation3] sm:$0xff] %vm265_vm2, %v351_v45 }
 0x423   : > { %v832_v14 = vld [vmem:[#allocation3] sm:$0xff] }
 0x424   : > { %1151 = vrcp.f32 %v832_v14 }
 0x431   : > { %v1152_v16 = vpop.eup %1151 }
 0x432   : > { %837 = vperm.xlu1 %1132, %v1152_v16  }
 0x468   : > { %v491_v47 = vpop.xlane.xlu0 %490 }
 0x469   : > { %v492_v48 = vadd.f32 %v491_v47, %v488_v46 }
 0x46b   : > { %493 = vst.msk [vmem:[#allocation3 + $0x8] sm:$0xff] %vm265_vm2, %v492_v48 }
 0x470   : > { %v630_v51 = vpop.xlane.xlu1 %629 }
 0x471   : > { %v631_v52 = vadd.f32 %v630_v51, %v627_v50 }
 0x472   : > { %v844_v53 = vld [vmem:[#allocation3 + $0x8] sm:$0xff] }
 0x473   : > { %632 = vst.msk [vmem:[#allocation3 + $0x10] sm:$0xff] %vm265_vm2, %v631_v52  ;;  %1153 = vrcp.f32 %v844_v53 }
 0x474   : > { %v499_v5 = vpop.permute.xlu1 %498 }
 0x475   : > { %v501_v6 = vmul.f32 %v499_v5, %v495_v4 }
 0x478   : > { %v766_v56 = vpop.xlane.xlu0 %765 }
 0x479   : > { %v767_v57 = vadd.f32 %v766_v56, %v763_v55 }
 0x47a   : > { %v862_v58 = vld [vmem:[#allocation3 + $0x10] sm:$0xff] }
 0x47b   : > { %768 = vst.msk [vmem:[#allocation3 + $0x18] sm:$0xff] %vm265_vm2, %v767_v57  ;;  %1155 = vrcp.f32 %v862_v58 }
 0x480   : > { %v1154_v60 = vpop.eup %1153  ;;  %v358_v61 = vpop.permute.xlu0 %357 }
 0x481   : > { %v360_v62 = vmul.f32 %v358_v61, %v354_v59  ;;  %849 = vperm.xlu0 %1131, %v1154_v60  }
 0x482   : > { %v880_v63 = vld [vmem:[#allocation3 + $0x18] sm:$0xff] }
 0x483   : > { %v409_v1 = vadd.f32 %v1317_v34, %v360_v62  ;;  %1157 = vrcp.f32 %v880_v63  ;;  %v774_v34 = vpop.permute.xlu1 %773 }
 0x484   : > { %v638_v11 = vpop.permute.xlu0 %637  ;;  %v776_v28 = vmul.f32 %v774_v34, %v770_v24 }
 0x485   : > { %410 = vst.msk [vmem:[#allocation4] sm:$0xff] %vm274_vm0, %v409_v1  ;;  %v640_v15 = vmul.f32 %v638_v11, %v634_v10 }
 0x488   : > { %v1156_v2 = vpop.eup %1155 }
 0x489   : > { %867 = vperm.xlu0 %1131, %v1156_v2  }
 0x48c   : > { %v834_v20 = vld [vmem:[#allocation4] sm:$0xff] }
 0x490   : > { %v1158_v3 = vpop.eup %1157 }
 0x491   : > { %885 = vperm.xlu0 %1131, %v1158_v3  }
 0x4a4   : > { %v548_v7 = vpop.f32.mrf.mxu0 }
 0x4a5   : > { %v554_v8 = vadd.f32 %v548_v7, %v501_v6 }
 0x4a6   : > { %v1071_v9 = vpop.f32.mrf.mxu0 }
 0x4a7   : > { %555 = vst.msk [vmem:[#allocation4 + $0x8] sm:$0xff] %vm274_vm0, %v554_v8 }
 0x4a8   : > { %v551_v12 = vpop.f32.mrf.mxu0 }
 0x4aa   : > { %v1072_v13 = vpop.f32.mrf.mxu0 }
 0x4ac   : > { %v684_v18 = vpop.f32.mrf.mxu0 }
 0x4ad   : > { %v690_v19 = vadd.f32 %v684_v18, %v640_v15  ;;  %v838_v21 = vpop.permute.xlu1 %837 }
 0x4ae   : > { %v840_v22 = vmul.f32 %v838_v21, %v834_v20  ;;  %v1083_v23 = vpop.f32.mrf.mxu0  ;;  %v846_v36 = vld [vmem:[#allocation4 + $0x8] sm:$0xff] }
 0x4af   : > { %691 = vst.msk [vmem:[#allocation4 + $0x10] sm:$0xff] %vm274_vm0, %v690_v19 }
 0x4b0   : > { %v841_v25 = vpack.c.bf16 %v840_v22, %v840_v22  ;;  %v687_v26 = vpop.f32.mrf.mxu0 }
 0x4b2   : > { %843 = vst.msk [vmem:[%s1371_s4] sm:$0xf] %vm842_vm4, %v841_v25  ;;  %v1084_v27 = vpop.f32.mrf.mxu0 }
 0x4b4   : > { %v820_v29 = vpop.f32.mrf.mxu0 }
 0x4b5   : > { %v826_v30 = vadd.f32 %v820_v29, %v776_v28 }
 0x4b6   : > { %v1095_v31 = vpop.f32.mrf.mxu0  ;;  %v864_v40 = vld [vmem:[#allocation4 + $0x10] sm:$0xff] }
 0x4b7   : > { %827 = vst.msk [vmem:[#allocation4 + $0x18] sm:$0xff] %vm274_vm0, %v826_v30 }
 0x4b8   : > { %v823_v32 = vpop.f32.mrf.mxu0 }
 0x4ba   : > { %v1096_v33 = vpop.f32.mrf.mxu0 }
 0x4be   : > { %v882_v43 = vld [vmem:[#allocation4 + $0x18] sm:$0xff] }
 0x4fc   : > { %v850_v35 = vpop.permute.xlu0 %849 }
 0x4fd   : > { %v852_v37 = vmul.f32 %v850_v35, %v846_v36 }
 0x4ff   : > { %v1030_v38 = vpack.c.bf16 %v852_v37, %v852_v37 }
 0x501   : > { %857 = vrot.lane.b32.xlu1 %v1030_v38, %s1190_s5 }
 0x504   : > { %v868_v39 = vpop.permute.xlu0 %867 }
 0x505   : > { %v870_v41 = vmul.f32 %v868_v39, %v864_v40 }
 0x507   : > { %v1031_v0 = vpack.c.bf16 %v870_v41, %v870_v41 }
 0x509   : > { %875 = vrot.lane.b32.xlu1 %v1031_v0, %s1191_s6 }
 0x50c   : > { %v886_v42 = vpop.permute.xlu0 %885 }
 0x50d   : > { %v888_v44 = vmul.f32 %v886_v42, %v882_v43 }
 0x50f   : > { %v1032_v45 = vpack.c.bf16 %v888_v44, %v888_v44 }
 0x511   : > { %893 = vrot.lane.b32.xlu1 %v1032_v45, %s1192_s7 }
 0x573   : > { %v858_v14 = vpop.permute.xlu1 %857 }
 0x574   : > { %861 = vst.msk [vmem:[%s1371_s4] sm:$0xf] %vm860_vm5, %v858_v14 }
 0x57b   : > { %v876_v16 = vpop.permute.xlu1 %875 }
 0x57c   : > { %879 = vst.msk [vmem:[%s1371_s4] sm:$0xf] %vm878_vm6, %v876_v16 }
 0x583   : > { %v894_v17 = vpop.permute.xlu1 %893 }
 0x584   : > { %897 = vst.msk [vmem:[%s1371_s4] sm:$0xf] %vm896_vm7, %v894_v17 }
 0x585 PF: > { %s13_s14 = sadd.s32 1, %s1181_s14   ;;  %s1391_s12 = smov %s1177_s13 }
 0x586   : > { %p10_p5 = scmp.ge.s32.totalorder %s13_s14, 4   ;;  %s1392_s13 = smov %s1394_s15 }
 0x588   :  { %12 = sbr.rel (!%p10_p5) target bundleno = 2 (0x2), region = 85 }

// kernel: _lambda_.51
= control target key start
LH: loop header
LB: loop body
LE: loop exit
PB: predicated region body
PF: predicated region fallthrough
CT: control target
= control target key end

     0   :  { %vm28_vm0 = vcmask 261120   ;;  %v283_v0 = vmov 0.0   ;;  %vm284_vm1 = vmmov 0   ;;  %vm143_vm2 = vcmask 523264   ;;  %s361_s1 = inlined_call_operand.vmem [shape: bf16[32,64], index: 1, kind: input, shape index: {}]   ;;  %s362_s3 = inlined_call_operand.vmem [shape: bf16[64,32], index: 3, kind: input, shape index: {}]   ;;  %s363_s0 = inlined_call_operand.vmem [shape: bf16[16,32], index: 0, kind: input, shape index: {}, may-alias: {0,5}]   ;;  %s364_s2 = inlined_call_operand.vmem [shape: f32[1,64], index: 2, kind: input, shape index: {}]   ;;  %s365_s5 = inlined_call_operand.vmem [shape: bf16[16,32], index: 5, kind: input, shape index: {}, may-alias: {0,5}]   ;;  %s366_s4 = inlined_call_operand.vmem [shape: f32[1,32], index: 4, kind: input, shape index: {}]   ;;  %s367_s6 = inlined_call_operand.vmem [shape: bf16[16,32], index: 6, kind: output, shape index: {}]  }
   0x1   :  { %254 = vmatprep.subr.bf16.mxu0 %v283_v0  ;;  %v276_v1 = vld [vmem:[%s361_s1 + $0x8] sm:$0xff]   ;;  %258 = vmatprep.mubr.msk.bf16.mxu0 %vm284_vm1, %v283_v0  ;;  %29 = vst.msk [vmem:[#allocation2] sm:$0xff] %vm28_vm0, %v283_v0  ;;  %30 = vst.msk [vmem:[#allocation2 + $0x8] sm:$0xff] %vm28_vm0, %v283_v0  ;;  %v277_v2 = vld [vmem:[%s361_s1] sm:$0xff]   ;;  %vm220_vm3 = vcmask 257024  }
   0x2   :  { %262 = vmatprep.subr.bf16.mxu1 %v283_v0  ;;  %270 = vmatprep.mubr.msk.bf16.mxu1 %vm284_vm1, %v283_v0  ;;  %v279_v3 = vld [vmem:[%s362_s3 + $0x18] sm:$0xff]   ;;  %v278_v4 = vld [vmem:[%s363_s0] sm:$0xff]   ;;  %v280_v5 = vld [vmem:[%s362_s3 + $0x10] sm:$0xff]  }
   0x3   :  { %255 = vmatpush3.bf16.msra.mxu0 %v276_v1  ;;  %263 = vmatpush3.bf16.msra.mxu1 %v279_v3  ;;  %v281_v6 = vld [vmem:[%s362_s3 + $0x8] sm:$0xff]   ;;  %v282_v7 = vld [vmem:[%s362_s3] sm:$0xff]  }
   0x4   :  { %256 = vmatprep.subr.bf16.mxu0 %v283_v0  ;;  %264 = vmatprep.subr.bf16.mxu1 %v283_v0  ;;  %v227_v8 = vld [vmem:[%s364_s2] ss:$0 sm:$0xff] }
   0x5   :  { %v243_v25 = vld [vmem:[%s365_s5] sm:$0xff]  }
   0x6   :  { %v237_v27 = vld [vmem:[%s366_s4] ss:$0 sm:$0xff]  ;;  %v244_v28 = vunpack.c.l.bf16 %v243_v25  ;;  %v245_v32 = vunpack.c.h.bf16 %v243_v25 }
   0x7   :  { %257 = vmatpush3.bf16.msra.mxu0 %v277_v2  ;;  %265 = vmatpush3.bf16.msra.mxu1 %v280_v5 }
   0x8   :  { %266 = vmatprep.subr.bf16.mxu1 %v283_v0  ;;  %v109_v18 = vld [vmem:[#allocation2] sm:$0xff]  ;;  %v110_v22 = vld [vmem:[#allocation2 + $0x8] sm:$0xff] }
   0xa   :  { %259 = vmatmul.mubr.msk.bf16.vlgmr.msra.gmra.mxu0 %vm28_vm0, %v278_v4 }
   0xb   :  { %267 = vmatpush3.bf16.msra.mxu1 %v281_v6 }
   0xc   :  { %268 = vmatprep.subr.bf16.mxu1 %v283_v0 }
   0xf   :  { %269 = vmatpush3.bf16.msra.mxu1 %v282_v7 }
  0xca   :  { %v99_v9 = vpop.f32.mrf.mxu0 }
  0xcb   :  { %v100_v11 = vadd.f32 %v227_v8, %v99_v9 }
  0xcc   :  { %v260_v10 = vpop.f32.mrf.mxu0 }
  0xcd   :  { %v106_v15 = vmax.f32 %v100_v11, 0.0 }
  0xce   :  { %v102_v12 = vpop.f32.mrf.mxu0 }
  0xcf   :  { %v103_v13 = vadd.f32 %v227_v8, %v102_v12 }
  0xd0   :  { %v261_v14 = vpop.f32.mrf.mxu0 }
  0xd1   :  { %v107_v16 = vmax.f32 %v103_v13, 0.0 }
  0xd3   :  { %v108_v17 = vpack.c.bf16 %v107_v16, %v106_v15 }
  0xd5   :  { %271 = vmatmul.mubr.msk.bf16.vlgmr.msra.gmra.mxu1 %vm143_vm2, %v108_v17 }
 0x195   :  { %v181_v19 = vpop.f32.mrf.mxu1 }
 0x196   :  { %v188_v20 = vadd.f32 %v181_v19, %v109_v18 }
 0x197   :  { %v272_v21 = vpop.f32.mrf.mxu1 }
 0x198   :  { %190 = vst.msk [vmem:[#allocation2] sm:$0xff] %vm28_vm0, %v188_v20 }
 0x199   :  { %v184_v23 = vpop.f32.mrf.mxu1 }
 0x19a   :  { %v189_v24 = vadd.f32 %v184_v23, %v110_v22 }
 0x19b   :  { %v273_v26 = vpop.f32.mrf.mxu1 }
 0x19c   :  { %191 = vst.msk [vmem:[#allocation2 + $0x8] sm:$0xff] %vm28_vm0, %v189_v24 }
 0x19f   :  { %v195_v29 = vld [vmem:[#allocation2] sm:$0xff] }
 0x1a0   :  { %v204_v30 = vadd.f32 %v237_v27, %v195_v29 }
 0x1a2   :  { %v210_v31 = vadd.f32 %v244_v28, %v204_v30 }
 0x1a3   :  { %v196_v33 = vld [vmem:[#allocation2 + $0x8] sm:$0xff] }
 0x1a4   :  { %v240_v34 = vpack.c.bf16 %v210_v31, %v210_v31  ;;  %v205_v35 = vadd.f32 %v237_v27, %v196_v33 }
 0x1a6   :  { %221 = vst.msk [vmem:[%s367_s6] sm:$0xf] %vm220_vm3, %v240_v34  ;;  %v211_v36 = vadd.f32 %v245_v32, %v205_v35 }
 0x1a8   :  { %v241_v37 = vpack.c.bf16 %v211_v36, %v211_v36 }
 0x1aa   :  { %222 = vst.msk [vmem:[%s367_s6 + $0x4] sm:$0xf] %vm220_vm3, %v241_v37 }

// kernel: _lambda_.89
= control target key start
LH: loop header
LB: loop body
LE: loop exit
PB: predicated region body
PF: predicated region fallthrough
CT: control target
= control target key end

     0   :  { %v176_v1 = vmov 0.0   ;;  %vm177_vm0 = vmmov 0   ;;  %vm20_vm1 = vcmask 97280   ;;  %s222_s0 = inlined_call_operand.vmem [shape: bf16[16,32], index: 0, kind: input, shape index: {}]   ;;  %s223_s1 = inlined_call_operand.vmem [shape: bf16[32,12], index: 1, kind: input, shape index: {}]   ;;  %s224_s2 = inlined_call_operand.vmem [shape: f32[1,12], index: 2, kind: input, shape index: {}]   ;;  %s225_s3 = inlined_call_operand.hbm [shape: f32[16,12], index: 3, kind: output, shape index: {}]  }
   0x1   :  { %v151_v0 = vld [vmem:[%s223_s1 + $0x8] sm:$0xff]   ;;  %138 = vmatprep.subr.bf16.mxu0 %v176_v1  ;;  %v152_v2 = vld [vmem:[%s223_s1] sm:$0xff]   ;;  %142 = vmatprep.mubr.msk.bf16.mxu0 %vm177_vm0, %v176_v1 }
   0x2   :  { %139 = vmatpush3.bf16.msra.mxu0 %v151_v0 }
   0x3   :  { %140 = vmatprep.subr.bf16.mxu0 %v176_v1 }
   0x4   :  { %8 = vsyncpa [#allocation4], 0  ;;  %21 = vst.msk [vmem:[#allocation2] sm:$0xff] %vm20_vm1, %v176_v1  ;;  %v153_v3 = vld [vmem:[%s222_s0] sm:$0xff]   ;;  %vm48_vm2 = vcmask 261120   ;;  %s178_s0 = smov [#allocation3]  }
   0x5   :  { %22 = vst.msk [vmem:[#allocation2 + $0x8] sm:$0xff] %vm20_vm1, %v176_v1  ;;  %v134_v12 = vld [vmem:[%s224_s2] ss:$0 sm:$0xff]  ;;  %s119_s19 = sshll.u32 %s178_s0, 4  ;;  %s120_s19 = int_to_ptr.vmem [resolvable:$true] %s119_s19 }
   0x6   :  { %141 = vmatpush3.bf16.msra.mxu0 %v152_v2  ;;  %s154_s20 = scalar_lea.vmem %s120_s19, 256  ;;  %p159_p1 = scmp.lt.s32.totalorder %s120_s19, %s120_s19 }
   0x7   :  { %p155_p0 = scmp.ne.s32.totalorder %s120_s19, %s154_s20  ;;  %p160_p2 = scmp.lt.s32.totalorder %s154_s20, %s154_s20 }
   0x9   :  { %143 = vmatmul.mubr.msk.bf16.vlgmr.msra.gmra.mxu0 %vm48_vm2, %v153_v3  ;;  %p161_p3 = por %p160_p2, %p159_p1 }
   0xb   :  { %v23_v4 = vld [vmem:[#allocation2] sm:$0xff]  ;;  %p162_p4 = pnand %p161_p3, %p155_p0 }
   0xc   :  { %v24_v8 = vld [vmem:[#allocation2 + $0x8] sm:$0xff] }
  0xc9   :  { %v86_v5 = vpop.f32.mrf.mxu0 }
  0xca   :  { %v93_v6 = vadd.f32 %v86_v5, %v23_v4 }
  0xcb   :  { %v144_v7 = vpop.f32.mrf.mxu0 }
  0xcc   :  { %96 = vst.msk [vmem:[#allocation2] sm:$0xff] %vm20_vm1, %v93_v6 }
  0xcd   :  { %v89_v9 = vpop.f32.mrf.mxu0 }
  0xce   :  { %v94_v10 = vadd.f32 %v89_v9, %v24_v8 }
  0xcf   :  { %v145_v11 = vpop.f32.mrf.mxu0 }
  0xd0   :  { %97 = vst.msk [vmem:[#allocation2 + $0x8] sm:$0xff] %vm20_vm1, %v94_v10 }
  0xd3   :  { %v101_v13 = vld [vmem:[#allocation2] sm:$0xff] }
  0xd4   :  { %v110_v14 = vadd.f32 %v134_v12, %v101_v13 }
  0xd6   :  { %112 = vst.msk [vmem:[#allocation3] sm:$0xff] %vm20_vm1, %v110_v14 }
  0xd7   :  { %v102_v15 = vld [vmem:[#allocation2 + $0x8] sm:$0xff] }
  0xd8   :  { %v111_v16 = vadd.f32 %v134_v12, %v102_v15 }
  0xda   :  { %113 = vst.msk [vmem:[#allocation3 + $0x8] sm:$0xff] %vm20_vm1, %v111_v16 }
  0xdb   :  { %165 = shalt.err (!%p162_p4)
}
  0xdc   :  { %s179_s21 = smov 128   ;;  %s180_s2 = smov 8  }
  0xdd   :  { %125 = dma.vmem_to_hbm [thread:$0]  %s120_s19, 256, %s225_s3, [#allocation4], %s179_s21, %s179_s21, %s180_s2  }
  0xde   :  { %174 = dma.done.wait [#allocation4], 256  }
  0xdf   :  { %175 = vsyncadd [#allocation4], 4294967040 }
  0xe0   :  { %129 = vsyncpa [#allocation4], 1 }

</bundles_post_ra>
